<compile_context>
chip_gen: v7x
topology: tpu7x:2x2x1
jax: 0.10.0
libtpu: 0.0.40
codegen_flags: <defaults>
</compile_context>

<pallas_src>
import math

import jax
import jax.numpy as jnp
from jax import lax
from jax.experimental import pallas as pl
from jax.experimental.pallas import tpu as pltpu


def _round_up(x: int, m: int) -> int:
    return ((x + m - 1) // m) * m


def _vmem_capacity_bytes() -> int:
    """Generation-aware VMEM capacity with a conservative (v7x) fallback."""
    try:
        info = pltpu.get_tpu_info()
        cap = int(getattr(info, "vmem_capacity_bytes", 0) or 0)
        if cap > 0:
            return cap
    except Exception:
        pass
    return 64 * 1024 * 1024


def _make_kernel(da_tile: int, fin_chunk: int):
    """Build the kernel body (da_tile / finalize chunk are static closures)."""

    def kernel(row_start_ref, ntiles_ref,          # scalar-prefetch (SMEM)
               inv_n_ref,                          # SMEM per-pair 1/N table
               t_ref, a_ref,                       # VMEM tiles
               out_ref,                            # (1,1,8,128) partial ss
               acc_ref, colsum_t_ref, colsum_a_ref):
        p = pl.program_id(0)
        j = pl.program_id(2)
        n_tiles_p = ntiles_ref[p]

        @pl.when(j == 0)
        def _init():
            acc_ref[...] = jnp.zeros_like(acc_ref)
            colsum_t_ref[...] = jnp.zeros_like(colsum_t_ref)
            colsum_a_ref[...] = jnp.zeros_like(colsum_a_ref)

        # Skip compute entirely for grid steps past this pair's own tile count
        # (the index_map also clamps the block index there, so no DMA either).
        @pl.when(j < n_tiles_p)
        def _accumulate():
            t = t_ref[...]                      # (tile_n, dt_pad), native dtype
            a = a_ref[...]                      # (tile_n, da_tile)
            # t^T @ a : contract over rows — MXU, f32 accumulation.
            acc_ref[...] += lax.dot_general(
                t, a,
                dimension_numbers=(((0,), (0,)), ((), ())),
                preferred_element_type=jnp.float32)
            # Column sums on the MXU (rides the already-busy matmul slot)
            # instead of a VPU f32 cast + sublane reduction.
            ones_row = jnp.ones((1, t.shape[0]), dtype=t.dtype)
            colsum_t_ref[...] += lax.dot_general(
                ones_row, t,
                dimension_numbers=(((1,), (0,)), ((), ())),
                preferred_element_type=jnp.float32)
            colsum_a_ref[...] += lax.dot_general(
                ones_row, a,
                dimension_numbers=(((1,), (0,)), ((), ())),
                preferred_element_type=jnp.float32)

        @pl.when(j == n_tiles_p - 1)
        def _finalize():
            inv_n = inv_n_ref[p]                # true 1/N (padding excluded)
            ct = colsum_t_ref[...]              # (1, dt_pad)
            ss = jnp.float32(0.0)
            # Streamed epilogue: never materialise the full correction / sigma
            # matrices — bound temporaries to (dt_pad, fin_chunk).
            for c0 in range(0, da_tile, fin_chunk):
                ca = colsum_a_ref[:, c0:c0 + fin_chunk]          # (1, chunk)
                corr = lax.dot_general(
                    ct, ca,
                    dimension_numbers=(((0,), (0,)), ((), ())),
                    preferred_element_type=jnp.float32)
                sig = acc_ref[:, c0:c0 + fin_chunk] - inv_n * corr
                ss = ss + jnp.sum(sig * sig)
            out_ref[...] = jnp.full(out_ref.shape, ss, dtype=out_ref.dtype)

    return kernel


def row_ortho_loss(t_list, a_list, margin: float = 0.0, *,
                   tile_n_cap: int | None = None,
                   da_tile_cap: int | None = None) -> jax.Array:
    """JAX/Pallas equivalent of RowOrthLoss.forward (single fused kernel).

    tile_n_cap / da_tile_cap are optional test hooks forcing smaller tiles so
    the multi-row-tile and multi-Da-block paths can be exercised at tiny shapes.
    """
    assert len(t_list) == len(a_list) and len(t_list) > 0
    num_pairs = len(t_list)
    for t, a in zip(t_list, a_list):
        assert t.ndim == 2 and a.ndim == 2 and t.shape[0] == a.shape[0]

    compute_dtype = jnp.result_type(*[x.dtype for x in list(t_list) + list(a_list)])
    itemsize = jnp.dtype(compute_dtype).itemsize

    n_list = [int(t.shape[0]) for t in t_list]
    dt_list = [int(t.shape[1]) for t in t_list]
    da_list = [int(a.shape[1]) for a in a_list]
    n_max = max(n_list)
    dt_pad = _round_up(max(dt_list), 128)
    da_pad = _round_up(max(da_list), 128)

    # ---- generation-aware VMEM budgeting -------------------------------
    vmem_cap = _vmem_capacity_bytes()
    budget = vmem_cap // 2              # headroom for Mosaic internal scratch
    fin_chunk_cap = 256

    def vmem_estimate(tn, dat):
        in_bytes = 2 * tn * dt_pad * itemsize + 2 * tn * dat * itemsize  # 2 bufs each
        acc_bytes = dt_pad * dat * 4
        colsum_bytes = (dt_pad + dat) * 4
        fin_bytes = 2 * dt_pad * min(dat, fin_chunk_cap) * 4  # corr + sigma chunk
        out_bytes = 2 * 8 * 128 * 4
        return in_bytes + acc_bytes + colsum_bytes + fin_bytes + out_bytes

    # Row tile: big where VMEM allows (amortises per-step overhead, keeps the
    # MXU contraction dim at native width); never padded past the data.
    tile_n_pref = 512 if vmem_cap >= 96 * 2**20 else 256
    if tile_n_cap is not None:
        tile_n_pref = min(tile_n_pref, max(8, _round_up(int(tile_n_cap), 8)))
    tile_n = max(8, _round_up(min(tile_n_pref, _round_up(n_max, 8)), 8))

    # If the f32 accumulator (+ finalize temps) dominates, tile the Da axis
    # instead of shrinking tile_n (which would only shrink the MXU K dim).
    da_tile = da_pad
    if da_tile_cap is not None:
        da_tile = min(da_tile, max(128, _round_up(int(da_tile_cap), 128)))
    while da_tile > 128 and vmem_estimate(tile_n, da_tile) > budget:
        da_tile = max(128, _round_up(da_tile // 2, 128))
    while tile_n > 8 and vmem_estimate(tile_n, da_tile) > budget:   # last resort
        tile_n = max(8, _round_up(tile_n // 2, 8))

    da_pad_full = _round_up(da_pad, da_tile)
    n_da_blocks = da_pad_full // da_tile
    fin_chunk = math.gcd(da_tile, fin_chunk_cap)

    # ---- build per-pair tables and row-concatenated inputs --------------
    row_start, ntiles, t_parts, a_parts = [], [], [], []
    off = 0
    for t, a, n in zip(t_list, a_list, n_list):
        nt = -(-n // tile_n)
        row_start.append(off)
        ntiles.append(nt)
        off += nt
        rows_pad = nt * tile_n
        t_parts.append(jnp.pad(t.astype(compute_dtype),
                               ((0, rows_pad - n), (0, dt_pad - t.shape[1]))))
        a_parts.append(jnp.pad(a.astype(compute_dtype),
                               ((0, rows_pad - n), (0, da_pad_full - a.shape[1]))))
    t_cat = t_parts[0] if num_pairs == 1 else jnp.concatenate(t_parts, axis=0)
    a_cat = a_parts[0] if num_pairs == 1 else jnp.concatenate(a_parts, axis=0)

    max_tiles = max(ntiles)
    row_start_arr = jnp.asarray(row_start, dtype=jnp.int32)
    ntiles_arr = jnp.asarray(ntiles, dtype=jnp.int32)
    inv_n_arr = jnp.asarray([1.0 / n for n in n_list], dtype=jnp.float32)

    # ---- index maps (scalar-prefetch driven) -----------------------------
    def t_index(p, d, j, row_start_ref, ntiles_ref):
        jj = jnp.minimum(j, ntiles_ref[p] - 1)       # clamp -> no DMA past pair end
        return (row_start_ref[p] + jj, 0)

    def a_index(p, d, j, row_start_ref, ntiles_ref):
        jj = jnp.minimum(j, ntiles_ref[p] - 1)
        return (row_start_ref[p] + jj, d)

    def out_index(p, d, j, row_start_ref, ntiles_ref):
        return (p, d, 0, 0)

    grid = (num_pairs, n_da_blocks, max_tiles)
    est = vmem_estimate(tile_n, da_tile)
    vmem_limit = int(min(int(0.75 * vmem_cap), max(2 * est, 32 * 2**20)))

    kernel = _make_kernel(da_tile, fin_chunk)

    out = pl.pallas_call(
        kernel,
        out_shape=jax.ShapeDtypeStruct((num_pairs, n_da_blocks, 8, 128), jnp.float32),
        grid_spec=pltpu.PrefetchScalarGridSpec(
            num_scalar_prefetch=2,                     # row_start, ntiles
            grid=grid,
            in_specs=[
                pl.BlockSpec(memory_space=pltpu.MemorySpace.SMEM),   # inv_n table
                pl.BlockSpec((tile_n, dt_pad), t_index),
                pl.BlockSpec((tile_n, da_tile), a_index),
            ],
            out_specs=pl.BlockSpec((1, 1, 8, 128), out_index),
            scratch_shapes=[
                pltpu.VMEM((dt_pad, da_tile), jnp.float32),   # acc = t^T a block
                pltpu.VMEM((1, dt_pad), jnp.float32),         # column sums of t
                pltpu.VMEM((1, da_tile), jnp.float32),        # column sums of a
            ],
        ),
        compiler_params=pltpu.CompilerParams(
            dimension_semantics=("parallel", "parallel", "arbitrary"),
            vmem_limit_bytes=vmem_limit,
        ),
    )(row_start_arr, ntiles_arr, inv_n_arr, t_cat, a_cat)

    # Per-pair sum over Da blocks, clamp/normalise, mean — O(num_pairs) scalars.
    ss_per_pair = jnp.sum(out[:, :, 0, 0], axis=1)
    numel = jnp.asarray([dt * da for dt, da in zip(dt_list, da_list)],
                        dtype=jnp.float32)
    loss_per_pair = jnp.maximum(ss_per_pair - jnp.float32(margin), 0.0) / numel
    return jnp.sum(loss_per_pair) / jnp.float32(num_pairs)


def _row_ortho_loss_ref(t_list, a_list, margin: float = 0.0) -> jax.Array:
    """Pure-JAX reference (mirrors the PyTorch module) for validation."""
    loss = jnp.float32(0.0)
    for t, a in zip(t_list, a_list):
        t = t.astype(jnp.float32)
        a = a.astype(jnp.float32)
        t_c = t - jnp.mean(t, axis=0, keepdims=True)
        a_c = a - jnp.mean(a, axis=0, keepdims=True)
        sigma = t_c.T @ a_c
        loss = loss + jnp.maximum(jnp.sum(sigma ** 2) - margin, 0.0) / sigma.size
    return loss / float(len(t_list))


if __name__ == "__main__":
    key = jax.random.PRNGKey(0)
    k1, k2, k3, k4 = jax.random.split(key, 4)

    # Two feature pairs, small shapes: (N, D_t) / (N, D_a) per pair.
    # Different N and D per pair exercises the row-concat + prefetch-table path.
    t_list = [
        jax.random.normal(k1, (24, 32), dtype=jnp.float32),
        jax.random.normal(k2, (16, 64), dtype=jnp.float32),
    ]
    a_list = [
        jax.random.normal(k3, (24, 160), dtype=jnp.float32),
        jax.random.normal(k4, (16, 24), dtype=jnp.float32),
    ]
    margin = 0.0

    loss_ref = jax.block_until_ready(_row_ortho_loss_ref(t_list, a_list, margin))

    # Default config, forced multi-row-tile config (per-pair tile-count clamp),
    # and forced multi-Da-block config (accumulator D-tiling path).
    for cfg in (dict(), dict(tile_n_cap=8), dict(da_tile_cap=128)):
        loss = jax.block_until_ready(row_ortho_loss(t_list, a_list, margin, **cfg))
        assert jnp.allclose(loss, loss_ref, rtol=1e-4, atol=1e-4), (cfg, loss, loss_ref)

    print("KERNEL_OK")
</pallas_src>

<mosaic_0001>
module attributes {stable_mosaic.version = 11 : i64} {
  func.func @kernel(%arg0: i32, %arg1: i32, %arg2: i32, %arg3: memref<2xi32, #tpu.memory_space<smem>>, %arg4: memref<2xi32, #tpu.memory_space<smem>>, %arg5: memref<2xf32, #tpu.memory_space<smem>>, %arg6: memref<24x128xf32, #tpu.memory_space<vmem>>, %arg7: memref<24x256xf32, #tpu.memory_space<vmem>>, %arg8: memref<1x1x8x128xf32, #tpu.memory_space<vmem>>, %arg9: memref<128x256xf32, #tpu.memory_space<vmem>>, %arg10: memref<1x128xf32, #tpu.memory_space<vmem>>, %arg11: memref<1x256xf32, #tpu.memory_space<vmem>>) attributes {dimension_semantics = [#tpu.dimension_semantics<parallel>, #tpu.dimension_semantics<parallel>, #tpu.dimension_semantics<arbitrary>], iteration_bounds = array<i64: 2, 1, 1>, scalar_prefetch = 2 : i64, scratch_operands = 3 : i64, tpu.core_type = #tpu.core_type<tc>, window_params = [{transform_indices = @transform_0, window_bounds = array<i64: 2>}, {transform_indices = @transform_1, window_bounds = array<i64: 24, 128>}, {transform_indices = @transform_2, window_bounds = array<i64: 24, 256>}, {transform_indices = @transform_3, window_bounds = array<i64: 1, 1, 8, 128>}]} {
    %0 = arith.index_cast %arg0 : i32 to index
    %1 = memref.load %arg4[%0] : memref<2xi32, #tpu.memory_space<smem>>
    %c0_i32 = arith.constant 0 : i32
    %2 = arith.cmpi eq, %arg2, %c0_i32 : i32
    %3 = arith.extui %2 : i1 to i32
    %c0_i32_0 = arith.constant 0 : i32
    %4 = arith.cmpi ne, %3, %c0_i32_0 : i32
    scf.if %4 {
      %cst = arith.constant 0.000000e+00 : f32
      %12 = vector.broadcast %cst : f32 to vector<128x256xf32>
      %c0 = arith.constant 0 : index
      %c0_3 = arith.constant 0 : index
      %13 = vector.load %arg9[%c0, %c0_3] : memref<128x256xf32, #tpu.memory_space<vmem>>, vector<128x256xf32>
      tpu.vector_store %arg9[%c0, %c0_3], %12 {strides = array<i32>} : memref<128x256xf32, #tpu.memory_space<vmem>>, vector<128x256xf32>,
      %cst_4 = arith.constant 0.000000e+00 : f32
      %14 = vector.broadcast %cst_4 : f32 to vector<1x128xf32>
      %c0_5 = arith.constant 0 : index
      %c0_6 = arith.constant 0 : index
      %15 = vector.load %arg10[%c0_5, %c0_6] : memref<1x128xf32, #tpu.memory_space<vmem>>, vector<1x128xf32>
      tpu.vector_store %arg10[%c0_5, %c0_6], %14 {strides = array<i32>} : memref<1x128xf32, #tpu.memory_space<vmem>>, vector<1x128xf32>,
      %cst_7 = arith.constant 0.000000e+00 : f32
      %16 = vector.broadcast %cst_7 : f32 to vector<1x256xf32>
      %c0_8 = arith.constant 0 : index
      %c0_9 = arith.constant 0 : index
      %17 = vector.load %arg11[%c0_8, %c0_9] : memref<1x256xf32, #tpu.memory_space<vmem>>, vector<1x256xf32>
      tpu.vector_store %arg11[%c0_8, %c0_9], %16 {strides = array<i32>} : memref<1x256xf32, #tpu.memory_space<vmem>>, vector<1x256xf32>,
    } else {
    }
    %5 = arith.cmpi slt, %arg2, %1 : i32
    %6 = arith.extui %5 : i1 to i32
    %c0_i32_1 = arith.constant 0 : i32
    %7 = arith.cmpi ne, %6, %c0_i32_1 : i32
    scf.if %7 {
      %c0 = arith.constant 0 : index
      %c0_3 = arith.constant 0 : index
      %12 = vector.load %arg6[%c0, %c0_3] : memref<24x128xf32, #tpu.memory_space<vmem>>, vector<24x128xf32>
      %c0_4 = arith.constant 0 : index
      %c0_5 = arith.constant 0 : index
      %13 = vector.load %arg7[%c0_4, %c0_5] : memref<24x256xf32, #tpu.memory_space<vmem>>, vector<24x256xf32>
      %c0_6 = arith.constant 0 : index
      %c0_7 = arith.constant 0 : index
      %14 = vector.load %arg9[%c0_6, %c0_7] : memref<128x256xf32, #tpu.memory_space<vmem>>, vector<128x256xf32>
      %cst = arith.constant dense<0.000000e+00> : vector<128x256xf32>
      %15 = tpu.matmul %12, %13, %cst {dimension_numbers = #tpu.dot_dimension_numbers<[0], [0], [1], [1], [0, 1, 1, 1], [], []>} : vector<24x128xf32>, vector<24x256xf32>, vector<128x256xf32> -> vector<128x256xf32>
      %16 = arith.addf %14, %15 : vector<128x256xf32>
      %c0_8 = arith.constant 0 : index
      %c0_9 = arith.constant 0 : index
      %17 = vector.load %arg9[%c0_8, %c0_9] : memref<128x256xf32, #tpu.memory_space<vmem>>, vector<128x256xf32>
      tpu.vector_store %arg9[%c0_8, %c0_9], %16 {strides = array<i32>} : memref<128x256xf32, #tpu.memory_space<vmem>>, vector<128x256xf32>,
      %cst_10 = arith.constant 1.000000e+00 : f32
      %18 = vector.broadcast %cst_10 : f32 to vector<1x24xf32>
      %c0_11 = arith.constant 0 : index
      %c0_12 = arith.constant 0 : index
      %19 = vector.load %arg10[%c0_11, %c0_12] : memref<1x128xf32, #tpu.memory_space<vmem>>, vector<1x128xf32>
      %cst_13 = arith.constant dense<0.000000e+00> : vector<1x128xf32>
      %20 = tpu.matmul %18, %12, %cst_13 {dimension_numbers = #tpu.dot_dimension_numbers<[1], [0], [0], [1], [0, 0, 1, 1], [], []>} : vector<1x24xf32>, vector<24x128xf32>, vector<1x128xf32> -> vector<1x128xf32>
      %21 = arith.addf %19, %20 : vector<1x128xf32>
      %c0_14 = arith.constant 0 : index
      %c0_15 = arith.constant 0 : index
      %22 = vector.load %arg10[%c0_14, %c0_15] : memref<1x128xf32, #tpu.memory_space<vmem>>, vector<1x128xf32>
      tpu.vector_store %arg10[%c0_14, %c0_15], %21 {strides = array<i32>} : memref<1x128xf32, #tpu.memory_space<vmem>>, vector<1x128xf32>,
      %c0_16 = arith.constant 0 : index
      %c0_17 = arith.constant 0 : index
      %23 = vector.load %arg11[%c0_16, %c0_17] : memref<1x256xf32, #tpu.memory_space<vmem>>, vector<1x256xf32>
      %cst_18 = arith.constant dense<0.000000e+00> : vector<1x256xf32>
      %24 = tpu.matmul %18, %13, %cst_18 {dimension_numbers = #tpu.dot_dimension_numbers<[1], [0], [0], [1], [0, 0, 1, 1], [], []>} : vector<1x24xf32>, vector<24x256xf32>, vector<1x256xf32> -> vector<1x256xf32>
      %25 = arith.addf %23, %24 : vector<1x256xf32>
      %c0_19 = arith.constant 0 : index
      %c0_20 = arith.constant 0 : index
      %26 = vector.load %arg11[%c0_19, %c0_20] : memref<1x256xf32, #tpu.memory_space<vmem>>, vector<1x256xf32>
      tpu.vector_store %arg11[%c0_19, %c0_20], %25 {strides = array<i32>} : memref<1x256xf32, #tpu.memory_space<vmem>>, vector<1x256xf32>,
    } else {
    }
    %c1_i32 = arith.constant 1 : i32
    %8 = arith.subi %1, %c1_i32 : i32
    %9 = arith.cmpi eq, %arg2, %8 : i32
    %10 = arith.extui %9 : i1 to i32
    %c0_i32_2 = arith.constant 0 : i32
    %11 = arith.cmpi ne, %10, %c0_i32_2 : i32
    scf.if %11 {
      %12 = arith.index_cast %arg0 : i32 to index
      %13 = memref.load %arg5[%12] : memref<2xf32, #tpu.memory_space<smem>>
      %c0 = arith.constant 0 : index
      %c0_3 = arith.constant 0 : index
      %14 = vector.load %arg10[%c0, %c0_3] : memref<1x128xf32, #tpu.memory_space<vmem>>, vector<1x128xf32>
      %c0_4 = arith.constant 0 : index
      %c0_5 = arith.constant 0 : index
      %15 = vector.load %arg11[%c0_4, %c0_5] : memref<1x256xf32, #tpu.memory_space<vmem>>, vector<1x256xf32>
      %cst = arith.constant dense<0.000000e+00> : vector<128x256xf32>
      %16 = tpu.matmul %14, %15, %cst {dimension_numbers = #tpu.dot_dimension_numbers<[0], [0], [1], [1], [0, 1, 1, 1], [], []>} : vector<1x128xf32>, vector<1x256xf32>, vector<128x256xf32> -> vector<128x256xf32>
      %c0_6 = arith.constant 0 : index
      %c0_7 = arith.constant 0 : index
      %17 = vector.load %arg9[%c0_6, %c0_7] : memref<128x256xf32, #tpu.memory_space<vmem>>, vector<128x256xf32>
      %18 = vector.broadcast %13 : f32 to vector<128x256xf32>
      %19 = arith.mulf %18, %16 : vector<128x256xf32>
      %20 = arith.subf %17, %19 : vector<128x256xf32>
      %21 = arith.mulf %20, %20 : vector<128x256xf32>
      %22 = vector.shape_cast %21 : vector<128x256xf32> to vector<1x128x256xf32>
      %cst_8 = arith.constant dense<0.000000e+00> : vector<1xf32>
      %23 = vector.multi_reduction <add>, %22, %cst_8 [1, 2] : vector<1x128x256xf32> to vector<1xf32>
      %24 = vector.shape_cast %23 : vector<1xf32> to vector<1x1x1xf32>
      %25 = vector.extract %24[0, 0, 0] : f32 from vector<1x1x1xf32>
      %cst_9 = arith.constant 0.000000e+00 : f32
      %26 = arith.addf %cst_9, %25 : f32
      %27 = vector.broadcast %26 : f32 to vector<1x1x8x128xf32>
      %c0_10 = arith.constant 0 : index
      %c0_11 = arith.constant 0 : index
      %c0_12 = arith.constant 0 : index
      %c0_13 = arith.constant 0 : index
      %28 = vector.load %arg8[%c0_10, %c0_11, %c0_12, %c0_13] : memref<1x1x8x128xf32, #tpu.memory_space<vmem>>, vector<1x1x8x128xf32>
      tpu.vector_store %arg8[%c0_10, %c0_11, %c0_12, %c0_13], %27 {strides = array<i32>} : memref<1x1x8x128xf32, #tpu.memory_space<vmem>>, vector<1x1x8x128xf32>,
    } else {
    }
    return
  }
  func.func @transform_0(%arg0: i32, %arg1: i32, %arg2: i32, %arg3: memref<2xi32, #tpu.memory_space<smem>>, %arg4: memref<2xi32, #tpu.memory_space<smem>>) -> i32 {
    %c0_i32 = arith.constant 0 : i32
    %c0_i32_0 = arith.constant 0 : i32
    return %c0_i32 : i32
  }
  func.func @transform_1(%arg0: i32, %arg1: i32, %arg2: i32, %arg3: memref<2xi32, #tpu.memory_space<smem>>, %arg4: memref<2xi32, #tpu.memory_space<smem>>) -> (i32, i32) {
    %0 = arith.index_cast %arg0 : i32 to index
    %1 = memref.load %arg4[%0] : memref<2xi32, #tpu.memory_space<smem>>
    %c1_i32 = arith.constant 1 : i32
    %2 = arith.subi %1, %c1_i32 : i32
    %3 = arith.minsi %arg2, %2 : i32
    %4 = arith.index_cast %arg0 : i32 to index
    %5 = memref.load %arg3[%4] : memref<2xi32, #tpu.memory_space<smem>>
    %6 = arith.addi %5, %3 : i32
    %c0_i32 = arith.constant 0 : i32
    %c0_i32_0 = arith.constant 0 : i32
    return %6, %c0_i32 : i32, i32
  }
  func.func @transform_2(%arg0: i32, %arg1: i32, %arg2: i32, %arg3: memref<2xi32, #tpu.memory_space<smem>>, %arg4: memref<2xi32, #tpu.memory_space<smem>>) -> (i32, i32) {
    %0 = arith.index_cast %arg0 : i32 to index
    %1 = memref.load %arg4[%0] : memref<2xi32, #tpu.memory_space<smem>>
    %c1_i32 = arith.constant 1 : i32
    %2 = arith.subi %1, %c1_i32 : i32
    %3 = arith.minsi %arg2, %2 : i32
    %4 = arith.index_cast %arg0 : i32 to index
    %5 = memref.load %arg3[%4] : memref<2xi32, #tpu.memory_space<smem>>
    %6 = arith.addi %5, %3 : i32
    %c0_i32 = arith.constant 0 : i32
    return %6, %arg1 : i32, i32
  }
  func.func @transform_3(%arg0: i32, %arg1: i32, %arg2: i32, %arg3: memref<2xi32, #tpu.memory_space<smem>>, %arg4: memref<2xi32, #tpu.memory_space<smem>>) -> (i32, i32, i32, i32) {
    %c0_i32 = arith.constant 0 : i32
    %c0_i32_0 = arith.constant 0 : i32
    %c0_i32_1 = arith.constant 0 : i32
    return %arg0, %arg1, %c0_i32, %c0_i32_0 : i32, i32, i32, i32
  }
}

</mosaic_0001>

<bundles_post_ra>
// kernel: tpu_custom_call.1
= control target key start
LH: loop header
LB: loop body
LE: loop exit
PB: predicated region body
PF: predicated region fallthrough
CT: control target
= control target key end

     0   :  { %s2556_s0 = inlined_call_operand.hbm [shape: s32[2], index: 0, kind: input, shape index: {}]   ;;  %s2557_s2 = inlined_call_operand.vmem [shape: f32[2], index: 2, kind: input, shape index: {}]   ;;  %s2558_s3 = inlined_call_operand.hbm [shape: f32[48,128], index: 3, kind: input, shape index: {}]   ;;  %s2559_s4 = inlined_call_operand.hbm [shape: f32[48,256], index: 4, kind: input, shape index: {}]   ;;  %s2560_s5 = inlined_call_operand.hbm [shape: f32[2,1,8,128], index: 5, kind: output, shape index: {}]   ;;  %s2561_s1 = inlined_call_operand.vmem [shape: s32[2], index: 1, kind: input, shape index: {}]  }
   0x1   :  { %2577 = sst [smem:[#allocation35_spill]] %s2557_s2  ;;  %s1732_s20 = scalar_lea.hbm %s2556_s0, 16 }
   0x2   :  { %2578 = sst [smem:[#allocation36_spill]] %s2558_s3  ;;  %p1733_p0 = scmp.ne.s32.totalorder %s2556_s0, %s1732_s20 }
   0x3   :  { %2579 = sst [smem:[#allocation37_spill]] %s2560_s5  ;;  %p1736_p1 = scmp.lt.u32.totalorder %s1732_s20, %s2556_s0 }
   0x5   :  { %p1738_p2 = pnand %p1736_p1, %p1733_p0 }
   0x7   :  { %1741 = shalt.err (!%p1738_p2)  }
   0x8   :  { %s1971_s25 = smov [#allocation6]   ;;  %s12_s30 = sshll.u32 %s2561_s1, 4  ;;  %s13_s30 = int_to_ptr.vmem [resolvable:$true] %s12_s30 }
   0x9   :  { %11 = dma.hbm_to_smem %s2556_s0, 16, %s1971_s25, [#allocation5] }
   0xa   :  { %s1742_s6 = scalar_lea.vmem %s13_s30, 16  ;;  %p1747_p4 = scmp.lt.s32.totalorder %s13_s30, %s13_s30 }
   0xb   :  { %p1743_p3 = scmp.ne.s32.totalorder %s13_s30, %s1742_s6  ;;  %p1748_p5 = scmp.lt.s32.totalorder %s1742_s6, %s1742_s6 }
   0xd   :  { %p1749_p6 = por %p1748_p5, %p1747_p4 }
   0xf   :  { %p1750_p7 = pnand %p1749_p6, %p1743_p3 }
  0x11   :  { %1753 = shalt.err (!%p1750_p7)  }
  0x12   :  { %s1972_s7 = smov [#allocation7]  }
  0x13   :  { %15 = dma.vmem_to_smem %s13_s30, 16, %s1972_s7, [#allocation5] }
  0x14   :  { %1905 = dma.done.wait [#allocation5], 32 }
  0x15   :  { %1906 = vsyncadd [#allocation5], 4294967264 }
  0x16   :  { %17 = sfence }
  0x17   :  { %18 = vsyncpa [#allocation11], 0 }
  0x18   :  { %19 = vsyncpa [#allocation9], 0 }
  0x19   :  { %21 = vsyncpa [#allocation9 + $0x1], 0 }
  0x1a   :  { %22 = vsyncpa [#allocation14], 0 }
  0x1b   :  { %24 = vsyncpa [#allocation14 + $0x1], 0 }
  0x1c   :  { %25 = vsyncpa [#allocation10], 0 }
  0x1d   :  { %27 = vsyncpa [#allocation10 + $0x1], 0  ;;  %s2033_s0 = smov 0   ;;  %s2035_s1 = smov 0  }
  0x1e   :  { %s2037_s8 = smov 0   ;;  %s2039_s9 = smov 0  }
  0x1f   :  { %s2041_s10 = smov 0   ;;  %s2043_s11 = smov 0  }
  0x20   :  { %s2045_s12 = smov 0   ;;  %s2047_s13 = smov 0  }
  0x21   :  { %s2049_s14 = smov 0   ;;  %s2051_s15 = smov 0  }
  0x22   :  { %s2053_s16 = smov 0   ;;  %s2055_s17 = smov 0  }
  0x23 LB: > { %2580 = sst [smem:[#allocation29_spill]] %s1925_s0  ;;  %s1469_s18 = sadd.s32 4294967295, %s1969_s17   ;;  %s1969_s17 = sphi %s2055_s17, %s33_s17   ;;  %s1965_s16 = sphi %s2053_s16, %s2634_s16   ;;  %s1961_s15 = sphi %s2051_s15, %s2633_s15   ;;  %s1957_s14 = sphi %s2049_s14, %s2632_s14   ;;  %s1953_s13 = sphi %s2047_s13, %s2631_s13   ;;  %s1949_s12 = sphi %s2045_s12, %s2630_s12   ;;  %s1945_s11 = sphi %s2043_s11, %s2629_s11   ;;  %s1941_s10 = sphi %s2041_s10, %s2628_s10   ;;  %s1937_s9 = sphi %s2039_s9, %s2627_s9   ;;  %s1933_s8 = sphi %s2037_s8, %s2622_s8   ;;  %s1929_s1 = sphi %s2035_s1, %s2626_s1   ;;  %s1925_s0 = sphi %s2033_s0, %s2625_s0  }
  0x24   : > { %2581 = sst [smem:[#allocation30_spill]] %s1933_s8  ;;  %s1470_s19 = sadd.s32 4294967294, %s1969_s17  }
  0x25   : > { %s52_s20 = sadd.s32 1, %s1965_s16  ;;  %p105_p8 = scmp.ne.s32.totalorder %s1953_s13, %s1949_s12 }
  0x26   : > { %p54_p9 = scmp.ge.s32.totalorder %s52_s20, 2  ;;  %p2093_p10 = scmp.eq.s32.totalorder %s1469_s18, 0 }
  0x27   : > { %p145_p11 = scmp.ne.s32.totalorder %s1941_s10, %s1937_s9  ;;  %s160_s22 = sadd.s32 1, %s1933_s8 }
  0x28   : > { %s2582_s21 = scalar_select %p2093_p10, 1, 0 }
  0x29   : > { %s2636_s20 = smov (%p54_p9, %s52_s20), 0  ;;  %p2103_p12 = por %p2093_p10, %p105_p8 }
  0x2a   : > { %2583 = sst [smem:[#allocation31_spill]] %s2636_s20  ;;  %p2109_p13 = por %p145_p11, %p2093_p10 }
  0x2b   : > { %s2584_s23 = scalar_select %p2103_p12, 1, 0 }
  0x2c   : > { %s2585_s24 = scalar_select %p2109_p13, 1, 0 }
  0x2d   : > { %s155_s25 = ssub.s32 %s1965_s16, %s2636_s20  ;;  %p170_p0 = scmp.ne.s32.totalorder %s1933_s8, %s1929_s1 }
  0x2e   : > { %p158_p1 = scmp.eq.s32.totalorder %s155_s25, 0  ;;  %p171_p2 = scmp.eq.s32.totalorder %s1469_s18, 1 }
  0x2f   : > { %p176_p3 = scmp.ne.s32.totalorder %s1929_s1, %s1925_s0  ;;  %p177_p4 = scmp.eq.s32.totalorder %s1470_s19, 1 }
  0x30   : > { %s2120_s26 = scalar_select %p158_p1, %s1933_s8, %s160_s22  }
  0x31   : > { %p2122_p5 = por %p171_p2, %p170_p0  ;;  %p2126_p6 = por %p177_p4, %p176_p3 }
  0x32   : > { %2586 = sst [smem:[#allocation32_spill]] %s2120_s26  ;;  %p1479_p7 = scmp.ge.s32.totalorder %s1969_s17, 1 }
  0x33   : > { %s2587_s27 = scalar_select %p2122_p5, 1, 0 }
  0x34   : > { %s2588_s28 = scalar_select %p2126_p6, 1, 0 }
  0x35   : > { %p184_p8 = scmp.lt.s32.totalorder %s1969_s17, 3  ;;  %s2590_s2 = sld [smem:[#allocation35_spill]] }
  0x36   : > { %2589 = sst [smem:[#allocation33_spill]] %s2588_s28 }
  0x37   : > { %p2135_p9 = pnand %p1479_p7, %p184_p8  ;;  %s77_s9 = sld [smem:[#allocation7 + %s1965_s16]] }
  0x38   : > { %s83_s18 = sld [smem:[#allocation7 + %s2636_s20]] }
  0x39   : > { %s2591_s7 = scalar_select %p2135_p9, 1, 0 }
  0x3a   : > { %p1595_p0 = pneg %p2135_p9  ;;  %s2151_s19 = sld [smem:[#allocation6 + %s1965_s16]] }
  0x3b   : > { %s197_s6 = sshll.u32 %s2590_s2, 4  ;;  %s198_s6 = int_to_ptr.vmem [resolvable:$true] %s197_s6 }
  0x3c   : > { %p2145_p1 = pnand %p1595_p0, %p2093_p10  ;;  %s1754_s22 = scalar_lea.vmem %s198_s6, 16 }
  0x3d   : > { %p1755_p2 = scmp.ne.s32.totalorder %s198_s6, %s1754_s22  ;;  %p1762_p8 = scmp.lt.s32.totalorder %s198_s6, %s198_s6 }
  0x3e   : > { %p1756_p3 = pneg %p2145_p1  ;;  %p1763_p11 = scmp.lt.s32.totalorder %s1754_s22, %s1754_s22 }
  0x40   : > { %p1757_p4 = pnand %p1756_p3, %p1755_p2  ;;  %p1764_p6 = por %p1763_p11, %p1762_p8 }
  0x42   : > { %p1758_p7 = pneg %p1757_p4 }
  0x44   : > { %p1765_p5 = pnand %p1764_p6, %p1758_p7 }
  0x46   : > { %1768 = shalt.err (!%p1765_p5)
}
  0x47   : > { %s1973_s25 = smov [#allocation8]   ;;  %s87_s29 = sld [smem:[#allocation6 + %s2636_s20]] }
  0x48   : > { %1598 = dma.vmem_to_smem (!%p2145_p1), %s198_s6, 16, %s1973_s25, [#allocation11]  }
  0x49   : > { %p99_p0 = scmp.ne.s32.totalorder %s1957_s14, %s1953_s13  ;;  %s1471_s30 = sadd.s32 4294967295, %s77_s9 }
  0x4a   : > { %p2571_p6 = scmp.eq.s32.totalorder %s1969_s17, 0  ;;  %p2570_p5 = scmp.lt.s32.totalorder %s1969_s17, 2 }
  0x4b   : > { %p1472_p11 = scmp.gt.s32.totalorder %s1471_s30, 0  ;;  %s1473_s12 = sadd.s32 4294967295, %s83_s18 }
  0x4c   : > { %s2565_s22 = sand.u32 1, %s1957_s14   ;;  %p1474_p2 = scmp.gt.s32.totalorder %s1473_s12, 0 }
  0x4d   : > { %s2638_s30 = smov (%p1472_p11, %s1471_s30), 0  ;;  %p2165_p3 = por %p2571_p6, %p99_p0 }
  0x4e   : > { %s82_s6 = sadd.s32 %s2151_s19, %s2638_s30  ;;  %s1571_s9 = smul.u32 24, %s2565_s22 }
  0x4f   : > { %s2640_s12 = smov (%p1474_p2, %s1473_s12), 0  ;;  %p2176_p1 = pnand %p2570_p5, %p2165_p3 }
  0x50   : > { %s88_s25 = sadd.s32 %s87_s29, %s2640_s12  ;;  %s92_s26 = sadd.s32 1, %s1957_s14 }
  0x51   : > { %s89_s8 = ssub.s32 %s82_s6, %s88_s25  ;;  %s212_s22 = scalar_lea.vmem [#allocation12], %s1571_s9 }
  0x52   : > { %p90_p4 = scmp.eq.s32.totalorder %s89_s8, 0  ;;  %s225_s6 = sshll.u32 %s212_s22, 4  ;;  %s2197_s6 = int_to_ptr.vmem [resolvable:$true] %s225_s6 }
  0x53   : > { %s1579_s28 = scalar_select %p2165_p3, [#allocation7], [#allocation16] }
  0x54   : > { %s2184_s19 = scalar_select %p90_p4, %s1957_s14, %s92_s26  }
  0x55   : > { %s1580_s30 = scalar_select %p2165_p3, %s1965_s16, 0 }
  0x56   : > { %2595 = sst [smem:[#allocation34_spill]] %s2184_s19  ;;  %s2642_s28 = smov (!%p2570_p5, %s1579_s28), [#allocation20] }
  0x57   : > { %s2644_s30 = smov (!%p2570_p5, %s1580_s30), 0  ;;  %s115_s26 = sld [smem:[#allocation7 + %s1965_s16]] }
  0x58   : > { %s1581_s29 = scalar_select %p2165_p3, [#allocation6], [#allocation17] }
  0x59   : > { %s213_s12 = sld [smem:[%s2642_s28 + %s2644_s30]]  ;;  %p1771_p3 = pneg %p2176_p1 }
  0x5a   : > { %s2646_s29 = smov (!%p2570_p5, %s1581_s29), [#allocation21]  ;;  %s2201_s25 = sld [smem:[#allocation7 + %s2636_s20]] }
  0x5b   : > { %s217_s8 = sld [smem:[%s2646_s29 + %s2644_s30]] }
  0x5c   : > { %s2204_s2 = sld [smem:[#allocation6 + %s1965_s16]] }
  0x5d   : > { %s2207_s28 = sld [smem:[#allocation6 + %s2636_s20]]  ;;  %s1475_s22 = sadd.s32 4294967295, %s115_s26 }
  0x5e   : > { %p1476_p0 = scmp.gt.s32.totalorder %s1475_s22, 0  ;;  %s2596_s3 = sld [smem:[#allocation36_spill]] }
  0x5f   : > { %s1482_s19 = sadd.s32 4294967295, %s213_s12 }
  0x60   : > { %p1483_p7 = scmp.gt.s32.totalorder %s1482_s19, 0  ;;  %s2569_s29 = sadd.s32 4294967295, %s2201_s25 }
  0x61   : > { %s2650_s22 = smov (%p1476_p0, %s1475_s22), 0  ;;  %p2221_p11 = scmp.gt.s32.totalorder %s2569_s29, 0 }
  0x62   : > { %s2648_s19 = smov (%p1483_p7, %s1482_s19), 0 }
  0x63   : > { %s218_s9 = sadd.s32 %s217_s8, %s2648_s19  ;;  %s2598_s19 = sand.u32 1, %s1957_s14  }
  0x64   : > { %s1537_s30 = smul.u32 384, %s218_s9  ;;  %s2227_s8 = scalar_lea.sflag [#allocation9], %s2598_s19 }
  0x65   : > { %s1774_s9 = scalar_lea.hbm %s2596_s3, 768 }
  0x66   : > { %s2217_s12 = scalar_lea.hbm %s2596_s3, %s1537_s30 }
  0x67   : > { %s1769_s26 = scalar_lea.hbm %s2217_s12, 384  ;;  %p1775_p0 = scmp.lt.u32.totalorder %s2217_s12, %s2596_s3 }
  0x68   : > { %p1770_p2 = scmp.ne.s32.totalorder %s2217_s12, %s1769_s26  ;;  %p1776_p5 = scmp.lt.u32.totalorder %s1774_s9, %s1769_s26 }
  0x69   : > { %p1778_p6 = scmp.lt.u32.totalorder %s1769_s26, %s2217_s12 }
  0x6a   : > { %p1772_p4 = pnand %p1771_p3, %p1770_p2  ;;  %p1777_p8 = por %p1776_p5, %p1775_p0 }
  0x6c   : > { %p1773_p7 = pneg %p1772_p4  ;;  %p1779_p13 = por %p1778_p6, %p1777_p8 }
  0x6e   : > { %p1780_p12 = pnand %p1779_p13, %p1773_p7 }
  0x70   : > { %1783 = shalt.err (!%p1780_p12)
}
  0x71   : > { %s1784_s19 = scalar_lea.vmem %s2197_s6, 384  ;;  %s1974_s5 = smov [#allocation12]  }
  0x72   : > { %p1785_p2 = scmp.ne.s32.totalorder %s2197_s6, %s1784_s19  ;;  %s1789_s0 = sshll.u32 %s1974_s5, 4  ;;  %s1790_s0 = int_to_ptr.vmem [resolvable:$false] %s1789_s0 }
  0x73   : > { %s1791_s29 = scalar_lea.vmem %s1790_s0, 768  ;;  %p1792_p9 = scmp.lt.s32.totalorder %s2197_s6, %s1790_s0 }
  0x74   : > { %p1787_p4 = pnand %p1785_p2, %p1771_p3  ;;  %p1793_p5 = scmp.lt.s32.totalorder %s1791_s29, %s1784_s19 }
  0x76   : > { %p1788_p10 = pneg %p1787_p4  ;;  %p1794_p0 = por %p1793_p5, %p1792_p9 }
  0x78   : > { %p1795_p6 = pnand %p1794_p0, %p1788_p10 }
  0x7a   : > { %1798 = shalt.err (!%p1795_p6)
}
  0x7b   : > { %s1975_s26 = smov 128   ;;  %s1976_s9 = smov 8  }
  0x7c   : > { %1606 = dma.hbm_to_vmem [thread:$0]  (!%p2176_p1), %s2217_s12, 384, %s2197_s6, %s2227_s8, %s1975_s26, %s1975_s26, %s1976_s9  }
  0x7d   : > { %s120_s30 = sadd.s32 %s2204_s2, %s2650_s22  ;;  %s2599_s19 = sadd.s32 4294967295, %s2201_s25 }
  0x7e   : > { %s2652_s19 = smov (%p2221_p11, %s2599_s19), 0  ;;  %p2600_p10 = scmp.eq.s32.totalorder %s1969_s17, 0 }
  0x7f   : > { %p2601_p12 = scmp.ne.s32.totalorder %s1945_s11, %s1941_s10  ;;  %s126_s0 = sadd.s32 %s2207_s28, %s2652_s19 }
  0x80   : > { %s132_s29 = sadd.s32 1, %s1945_s11  ;;  %s127_s3 = ssub.s32 %s120_s30, %s126_s0 }
  0x81   : > { %p2266_p13 = por %p2601_p12, %p2600_p10  ;;  %s235_s18 = sand.u32 1, %s1945_s11  }
  0x82   : > { %p130_p9 = scmp.eq.s32.totalorder %s127_s3, 0  ;;  %p2603_p1 = scmp.lt.s32.totalorder %s1969_s17, 2 }
  0x83   : > { %s1584_s6 = scalar_select %p2266_p13, [#allocation7], [#allocation18] }
  0x84   : > { %p2277_p8 = pnand %p2603_p1, %p2266_p13  ;;  %p2605_p11 = pmov %p2603_p1 }
  0x85   : > { %s2284_s25 = scalar_select %p130_p9, %s1945_s11, %s132_s29  }
  0x86   : > { %s1585_s2 = scalar_select %p2266_p13, %s1965_s16, 0 }
  0x87   : > { %s2654_s6 = smov (!%p2605_p11, %s1584_s6), [#allocation22]  ;;  %p2606_p3 = pmov %p2603_p1 }
  0x88   : > { %s1586_s28 = scalar_select %p2266_p13, [#allocation6], [#allocation19] }
  0x89   : > { %s2656_s2 = smov (!%p2606_p3, %s1585_s2), 0  ;;  %s1572_s22 = smul.u32 48, %s235_s18 }
  0x8a   : > { %s240_s3 = sld [smem:[%s2654_s6 + %s2656_s2]]  ;;  %p2607_p7 = pmov %p2603_p1 }
  0x8b   : > { %s239_s26 = scalar_lea.vmem [#allocation13], %s1572_s22  ;;  %s2304_s6 = scalar_lea.sflag [#allocation14], %s235_s18 }
  0x8c   : > { %s2658_s28 = smov (!%p2607_p7, %s1586_s28), [#allocation23]  ;;  %s255_s9 = sshll.u32 %s239_s26, 4  ;;  %s2297_s9 = int_to_ptr.vmem [resolvable:$true] %s255_s9 }
  0x8d   : > { %s244_s12 = sld [smem:[%s2658_s28 + %s2656_s2]]  ;;  %p1801_p5 = pneg %p2277_p8 }
  0x90   : > { %s1485_s8 = sadd.s32 4294967295, %s240_s3  ;;  %s1804_s3 = scalar_lea.hbm %s2559_s4, 1536 }
  0x91   : > { %p1486_p2 = scmp.gt.s32.totalorder %s1485_s8, 0 }
  0x93   : > { %s2660_s8 = smov (%p1486_p2, %s1485_s8), 0 }
  0x94   : > { %s245_s30 = sadd.s32 %s244_s12, %s2660_s8 }
  0x95   : > { %s1540_s19 = smul.u32 768, %s245_s30 }
  0x97   : > { %s2302_s5 = scalar_lea.hbm %s2559_s4, %s1540_s19 }
  0x98   : > { %s1799_s2 = scalar_lea.hbm %s2302_s5, 768  ;;  %p1805_p10 = scmp.lt.u32.totalorder %s2302_s5, %s2559_s4 }
  0x99   : > { %p1800_p4 = scmp.ne.s32.totalorder %s2302_s5, %s1799_s2  ;;  %p1806_p12 = scmp.lt.u32.totalorder %s1804_s3, %s1799_s2 }
  0x9a   : > { %p1808_p9 = scmp.lt.u32.totalorder %s1799_s2, %s2302_s5 }
  0x9b   : > { %p1802_p0 = pnand %p1801_p5, %p1800_p4  ;;  %p1807_p13 = por %p1806_p12, %p1805_p10 }
  0x9d   : > { %p1803_p6 = pneg %p1802_p0  ;;  %p1809_p1 = por %p1808_p9, %p1807_p13 }
  0x9f   : > { %p1810_p11 = pnand %p1809_p1, %p1803_p6 }
  0xa1   : > { %1813 = shalt.err (!%p1810_p11)
}
  0xa2   : > { %s1814_s18 = scalar_lea.vmem %s2297_s9, 768  ;;  %s1977_s26 = smov [#allocation13]  }
  0xa3   : > { %p1815_p3 = scmp.ne.s32.totalorder %s2297_s9, %s1814_s18  ;;  %s1819_s30 = sshll.u32 %s1977_s26, 4  ;;  %s1820_s30 = int_to_ptr.vmem [resolvable:$false] %s1819_s30 }
  0xa4   : > { %s1821_s19 = scalar_lea.vmem %s1820_s30, 1536  ;;  %p1822_p4 = scmp.lt.s32.totalorder %s2297_s9, %s1820_s30 }
  0xa5   : > { %p1817_p7 = pnand %p1815_p3, %p1801_p5  ;;  %p1823_p0 = scmp.lt.s32.totalorder %s1821_s19, %s1814_s18 }
  0xa7   : > { %p1818_p2 = pneg %p1817_p7  ;;  %p1824_p10 = por %p1823_p0, %p1822_p4 }
  0xa9   : > { %p1825_p12 = pnand %p1824_p10, %p1818_p2 }
  0xab   : > { %1828 = shalt.err (!%p1825_p12)
}
  0xac   : > { %s1978_s0 = smov 256   ;;  %s1979_s29 = smov 16  }
  0xad   : > { %1613 = dma.hbm_to_vmem [thread:$0]  (!%p2277_p8), %s2302_s5, 768, %s2297_s9, %s2304_s6, %s1978_s0, %s1978_s0, %s1979_s29  }
  0xae   : > { %p2608_p5 = scmp.ne.s32.totalorder %s2591_s7, 0 }
  0xaf   : > { %p2609_p6 = scmp.ne.s32.totalorder (!%p2608_p5), %s2582_s21, 0 }
  0xb0   : > { %267 = sbr.rel (%p2608_p5) target bundleno = 1276 (0x4fc), region = 32 }
  0xb7   : > { %1908 = dma.done.wait (%p2609_p6), [#allocation11], 16  }
  0xb8   : > { %1910 = vsyncadd (%p2609_p6), [#allocation11], 4294967280  ;;  %s273_s2 = sand.u32 1, %s1953_s13   ;;  %p2610_p13 = scmp.ne.s32.totalorder %s2584_s23, 0 }
  0xb9   : > { %s1573_s28 = smul.u32 24, %s273_s2  ;;  %s274_s22 = scalar_lea.sflag [#allocation9], %s273_s2 }
  0xbb   : > { %s2339_s3 = scalar_lea.vmem [#allocation12], %s1573_s28 }
  0xbc   : > { %1912 = dma.done.wait (%p2610_p13), %s274_s22, 384  }
  0xbd   : > { %1914 = vsyncadd (%p2610_p13), %s274_s22, 4294966912  ;;  %s282_s7 = sand.u32 1, %s1941_s10   ;;  %p2611_p8 = scmp.ne.s32.totalorder %s2585_s24, 0 }
  0xbe   : > { %s1574_s20 = smul.u32 48, %s282_s7  ;;  %s283_s9 = scalar_lea.sflag [#allocation14], %s282_s7 }
  0xc0   : > { %s2346_s5 = scalar_lea.vmem [#allocation13], %s1574_s20 }
  0xc1   : > { %1916 = dma.done.wait (%p2611_p8), %s283_s9, 768  }
  0xc2   : > { %1918 = vsyncadd (%p2611_p8), %s283_s9, 4294966528 }
  0xc3   : > { %291 = sfence }
  0xc4   : > { %s312_s21 = sand.u32 1, %s1929_s1   ;;  %s2354_s6 = sld [smem:[#allocation7 + %s1961_s15]]  ;;  %v368_v0 = vlaneseq  ;;  %v1980_v1 = vmov 0.0  }
  0xc5   : > { %s2358_s23 = sshll.u32 %s312_s21, 3  ;;  %335 = vst [vmem:[#allocation2] sm:$0xff] %v1980_v1  ;;  %336 = vst [vmem:[#allocation2 + $0x8] sm:$0xff] %v1980_v1 }
  0xc6   : > { %337 = vst [vmem:[#allocation2 + $0x10] sm:$0xff] %v1980_v1  ;;  %338 = vst [vmem:[#allocation2 + $0x18] sm:$0xff] %v1980_v1  ;;  %vm2361_vm0 = vcmp.lt.s32.totalorder %v368_v0, 256  ;;  %s314_s24 = scalar_lea.vmem [#allocation15], %s2358_s23 }
  0xc7   : > { %339 = vst [vmem:[#allocation2 + $0x20] sm:$0xff] %v1980_v1  ;;  %340 = vst [vmem:[#allocation2 + $0x28] sm:$0xff] %v1980_v1 }
  0xc8   : > { %341 = vst [vmem:[#allocation2 + $0x30] sm:$0xff] %v1980_v1  ;;  %342 = vst [vmem:[#allocation2 + $0x38] sm:$0xff] %v1980_v1 }
  0xc9   : > { %343 = vst [vmem:[#allocation2 + $0x40] sm:$0xff] %v1980_v1  ;;  %344 = vst [vmem:[#allocation2 + $0x48] sm:$0xff] %v1980_v1 }
  0xca   : > { %345 = vst [vmem:[#allocation2 + $0x50] sm:$0xff] %v1980_v1  ;;  %346 = vst [vmem:[#allocation2 + $0x58] sm:$0xff] %v1980_v1  ;;  %p1493_p9 = scmp.le.s32.totalorder %s2354_s6, 0 }
  0xcb   : > { %347 = vst [vmem:[#allocation2 + $0x60] sm:$0xff] %v1980_v1  ;;  %348 = vst [vmem:[#allocation2 + $0x68] sm:$0xff] %v1980_v1  ;;  %v377_v3 = vld [vmem:[%s2339_s3] sm:$0xff] (!%p1493_p9)  ;;  %v378_v4 = vld [vmem:[%s2339_s3 + $0x8] sm:$0xff] (!%p1493_p9)  ;;  %v1981_v9 = vmov (!%p1493_p9), 0.0   ;;  %v1982_v16 = vmov (!%p1493_p9), 0.0|0.0  }
  0xcc   : > { %349 = vst [vmem:[#allocation2 + $0x70] sm:$0xff] %v1980_v1  ;;  %350 = vst [vmem:[#allocation2 + $0x78] sm:$0xff] %v1980_v1  ;;  %418 = vxpose.xlu0.b32.start [1/3] (short) (!%p1493_p9), %v377_v3, 128  ;;  %v1559_v5 = vpack.c.bf16 (!%p1493_p9), %v378_v4, %v377_v3  ;;  %v381_v6 = vld [vmem:[%s2346_s5 + $0x8] sm:$0xff] (!%p1493_p9)  ;;  %v383_v7 = vld [vmem:[%s2346_s5 + $0x18] sm:$0xff] (!%p1493_p9)  ;;  %563 = vmatprep.mubr.f32.mxu0 (!%p1493_p9), %v1981_v9  ;;  %vm450_vm1 = vcmask (!%p1493_p9), 195584   ;;  %vm1983_vm2 = vmmov (!%p1493_p9), 0  }
  0xcd   : > { %351 = vst [vmem:[#allocation2 + $0x80] sm:$0xff] %v1980_v1  ;;  %352 = vst [vmem:[#allocation2 + $0x88] sm:$0xff] %v1980_v1  ;;  %v380_v8 = vld [vmem:[%s2346_s5] sm:$0xff] (!%p1493_p9)  ;;  %v1554_v10 = vpack.c.bf16 (!%p1493_p9), %v383_v7, %v381_v6  ;;  %v382_v11 = vld [vmem:[%s2346_s5 + $0x10] sm:$0xff] (!%p1493_p9)  ;;  %623 = vmatprep.mubr.f32.mxu1 (!%p1493_p9), %v1981_v9  ;;  %v1984_v33 = vmov (!%p1493_p9), 1.0  }
  0xce   : > { %353 = vst [vmem:[#allocation2 + $0x90] sm:$0xff] %v1980_v1  ;;  %354 = vst [vmem:[#allocation2 + $0x98] sm:$0xff] %v1980_v1  ;;  %v2377_v12 = vpack.c.bf16 (!%p1493_p9), %v382_v11, %v380_v8  ;;  %v2380_v13 = vld [vmem:[%s2346_s5 + $0x28] sm:$0xff] (!%p1493_p9)  ;;  %v2386_v15 = vld [vmem:[%s2346_s5 + $0x20] sm:$0xff] (!%p1493_p9) }
  0xcf   : > { %355 = vst [vmem:[#allocation2 + $0xa0] sm:$0xff] %v1980_v1  ;;  %356 = vst [vmem:[#allocation2 + $0xa8] sm:$0xff] %v1980_v1  ;;  %376 = sbr.rel (%p1493_p9) target bundleno = 625 (0x271), region = 52  ;;  %1555 = vmatprep.subr.bf16.mxu0 (!%p1493_p9), %v1554_v10  ;;  %1565 = vmatprep.subr.bf16.mxu1 (!%p1493_p9), %v1554_v10  ;;  %v379_v14 = vld [vmem:[%s2339_s3 + $0x10] sm:$0xff] (!%p1493_p9)  ;;  %v386_v34 = vld [vmem:[#allocation2] sm:$0xff] (!%p1493_p9) }
  0xd0   : > { %357 = vst [vmem:[#allocation2 + $0xb0] sm:$0xff] %v1980_v1  ;;  %358 = vst [vmem:[#allocation2 + $0xb8] sm:$0xff] %v1980_v1  ;;  %419 = vxpose.xlu0.b32.cont [2/3] (short) (!%p1493_p9), %v378_v4, 128  ;;  %1557 = vmatpush1.bf16.msra.mxu0 (!%p1493_p9), %v2377_v12  ;;  %v387_v35 = vld [vmem:[#allocation2 + $0x8] sm:$0xff] (!%p1493_p9)  ;;  %v388_v40 = vld [vmem:[#allocation2 + $0x10] sm:$0xff] (!%p1493_p9) }
  0xd1   : > { %359 = vst [vmem:[#allocation2 + $0xc0] sm:$0xff] %v1980_v1  ;;  %360 = vst [vmem:[#allocation2 + $0xc8] sm:$0xff] %v1980_v1  ;;  %503 = vmatprep.subr.mxu0 (!%p1493_p9), %v2380_v13  ;;  %1567 = vmatpush1.bf16.msra.mxu1 (!%p1493_p9), %v2377_v12  ;;  %v389_v41 = vld [vmem:[#allocation2 + $0x18] sm:$0xff] (!%p1493_p9)  ;;  %v390_v46 = vld [vmem:[#allocation2 + $0x20] sm:$0xff] (!%p1493_p9) }
  0xd2   : > { %361 = vst [vmem:[#allocation2 + $0xd0] sm:$0xff] %v1980_v1  ;;  %362 = vst [vmem:[#allocation2 + $0xd8] sm:$0xff] %v1980_v1  ;;  %1566 = vmatprep.subr.mxu1 (!%p1493_p9), %v2380_v13  ;;  %v391_v47 = vld [vmem:[#allocation2 + $0x28] sm:$0xff] (!%p1493_p9)  ;;  %v392_v52 = vld [vmem:[#allocation2 + $0x30] sm:$0xff] (!%p1493_p9) }
  0xd3   : > { %363 = vst [vmem:[#allocation2 + $0xe0] sm:$0xff] %v1980_v1  ;;  %364 = vst [vmem:[#allocation2 + $0xe8] sm:$0xff] %v1980_v1  ;;  %v393_v53 = vld [vmem:[#allocation2 + $0x38] sm:$0xff] (!%p1493_p9)  ;;  %v394_v58 = vld [vmem:[#allocation2 + $0x40] sm:$0xff] (!%p1493_p9) }
  0xd4   : > { %365 = vst [vmem:[#allocation2 + $0xf0] sm:$0xff] %v1980_v1  ;;  %366 = vst [vmem:[#allocation2 + $0xf8] sm:$0xff] %v1980_v1  ;;  %420 = vxpose.xlu0.b32.end [3/3] (short) (!%p1493_p9), %v379_v14, 128  ;;  %504 = vmatpush1.msra.mxu0 (!%p1493_p9), %v2386_v15  ;;  %v395_v59 = vld [vmem:[#allocation2 + $0x48] sm:$0xff] (!%p1493_p9)  ;;  %v397_v3 = vld [vmem:[#allocation2 + $0x58] sm:$0xff] (!%p1493_p9) }
  0xd5   : > { %367 = vst [vmem:[#allocation3] sm:$0x1] %v1980_v1  ;;  %372 = vst.msk [vmem:[#allocation4] sm:$0x3] %vm2361_vm0, %v1980_v1  ;;  %1568 = vmatpush1.msra.mxu1 (!%p1493_p9), %v2386_v15  ;;  %v396_v1 = vld [vmem:[#allocation2 + $0x50] sm:$0xff] (!%p1493_p9)  ;;  %v398_v8 = vld [vmem:[#allocation2 + $0x60] sm:$0xff] (!%p1493_p9) }
  0xd6   : > { %1558 = vmatprep.subr.bf16.mxu1 %v1982_v16 }
 0x14c   : > { %v434_v17 = vpop.trf.xlu0 }
 0x14d   : > { %1494 = vmatmul.mubr.msk.f32.vlgmr.msra.gmra.mrb[0].mxu0 %vm450_vm1, %v434_v17 }
 0x14e   : > { %569 = vmatprep.mubr.f32.mxu0 %v1981_v9 }
 0x150   : > { %v435_v18 = vpop.trf.xlu0 }
 0x151   : > { %1495 = vmatmul.mubr.msk.f32.gmra.mrb[2].mxu0 %vm450_vm1, %v435_v18 }
 0x152   : > { %575 = vmatprep.mubr.f32.mxu0 %v1981_v9 }
 0x154   : > { %v436_v19 = vpop.trf.xlu0 }
 0x155   : > { %1496 = vmatmul.mubr.msk.f32.gmra.mrb[4].mxu0 %vm450_vm1, %v436_v19 }
 0x156   : > { %581 = vmatprep.mubr.f32.mxu0 %v1981_v9 }
 0x158   : > { %v437_v20 = vpop.trf.xlu0 }
 0x159   : > { %1497 = vmatmul.mubr.msk.f32.gmra.mrb[6].mxu0 %vm450_vm1, %v437_v20  ;;  %v402_v20 = vld [vmem:[#allocation2 + $0x80] sm:$0xff] }
 0x15a   : > { %587 = vmatprep.mubr.f32.mxu0 %v1981_v9 }
 0x15c   : > { %v438_v21 = vpop.trf.xlu0 }
 0x15d   : > { %1498 = vmatmul.mubr.msk.f32.gmra.mrb[8].mxu0 %vm450_vm1, %v438_v21  ;;  %v403_v21 = vld [vmem:[#allocation2 + $0x88] sm:$0xff] }
 0x15e   : > { %593 = vmatprep.mubr.f32.mxu0 %v1981_v9 }
 0x160   : > { %v439_v22 = vpop.trf.xlu0 }
 0x161   : > { %1499 = vmatmul.mubr.msk.f32.gmra.mrb[10].mxu0 %vm450_vm1, %v439_v22 }
 0x162   : > { %599 = vmatprep.mubr.f32.mxu0 %v1981_v9 }
 0x164   : > { %v440_v23 = vpop.trf.xlu0 }
 0x165   : > { %1500 = vmatmul.mubr.msk.f32.gmra.mrb[12].mxu0 %vm450_vm1, %v440_v23 }
 0x166   : > { %605 = vmatprep.mubr.f32.mxu0 %v1981_v9 }
 0x168   : > { %v441_v24 = vpop.trf.xlu0 }
 0x169   : > { %1501 = vmatmul.mubr.msk.f32.gmra.mrb[14].mxu0 %vm450_vm1, %v441_v24 }
 0x16a   : > { %611 = vmatprep.mubr.f32.mxu0 %v1981_v9 }
 0x16c   : > { %v442_v25 = vpop.trf.xlu0 }
 0x16d   : > { %1502 = vmatmul.mubr.msk.f32.gmra.mrb[16].mxu0 %vm450_vm1, %v442_v25 }
 0x16e   : > { %617 = vmatprep.mubr.f32.mxu0 %v1981_v9 }
 0x170   : > { %v443_v26 = vpop.trf.xlu0 }
 0x171   : > { %1503 = vmatmul.mubr.msk.f32.gmra.mrb[18].mxu0 %vm450_vm1, %v443_v26  ;;  %v404_v26 = vld [vmem:[#allocation2 + $0x90] sm:$0xff] }
 0x174   : > { %v444_v27 = vpop.trf.xlu0 }
 0x175   : > { %1504 = vmatmul.mubr.msk.f32.vlgmr.msra.gmra.mrb[0].mxu1 %vm450_vm1, %v444_v27  ;;  %v405_v27 = vld [vmem:[#allocation2 + $0x98] sm:$0xff] }
 0x176   : > { %1560 = vmatpush3.bf16.msra.mxu1 %v1559_v5  ;;  %629 = vmatprep.mubr.f32.mxu1 %v1981_v9 }
 0x177   : > { %1549 = vmatprep.subr.mxu1 %v1981_v9 }
 0x178   : > { %v445_v28 = vpop.trf.xlu0 }
 0x179   : > { %1505 = vmatmul.mubr.msk.f32.gmra.mrb[2].mxu1 %vm450_vm1, %v445_v28 }
 0x17a   : > { %635 = vmatprep.mubr.f32.mxu1 %v1981_v9  ;;  %1550 = vmatpush3.msra.mxu1 %v379_v14  ;;  %v400_v14 = vld [vmem:[#allocation2 + $0x70] sm:$0xff] }
 0x17b   : > { %1562 = vmatprep.subr.bf16.mxu1 %v1554_v10 }
 0x17c   : > { %v446_v29 = vpop.trf.xlu0 }
 0x17d   : > { %1506 = vmatmul.mubr.msk.f32.gmra.mrb[4].mxu1 %vm450_vm1, %v446_v29 }
 0x17e   : > { %641 = vmatprep.mubr.f32.mxu1 %v1981_v9 }
 0x180   : > { %v447_v30 = vpop.trf.xlu0 }
 0x181   : > { %1507 = vmatmul.mubr.msk.f32.gmra.mrb[6].mxu1 %vm450_vm1, %v447_v30 }
 0x182   : > { %647 = vmatprep.mubr.f32.mxu1 %v1981_v9 }
 0x184   : > { %v448_v31 = vpop.trf.xlu0 }
 0x185   : > { %1508 = vmatmul.mubr.msk.f32.gmra.mrb[8].mxu1 %vm450_vm1, %v448_v31 }
 0x186   : > { %653 = vmatprep.mubr.f32.mxu1 %v1981_v9 }
 0x188   : > { %v449_v32 = vpop.trf.xlu0 }
 0x189   : > { %1509 = vmatmul.mubr.msk.f32.gmra.mrb[10].mxu1 %vm450_vm1, %v449_v32  ;;  %v406_v32 = vld [vmem:[#allocation2 + $0xa0] sm:$0xff] }
 0x18a   : > { %1551 = vmatprep.mubr.msk.f32.mxu1 %vm1983_vm2, %v1981_v9 }
 0x18d   : > { %1552 = vmatmul.mubr.msk.f32.vlgmr.msra.gmra.mrb[12].mxu1 %vm450_vm1, %v1984_v33 }
 0x18e   : > { %1564 = vmatpush1.bf16.msra.mxu1 %v2377_v12  ;;  %865 = vmatprep.mubr.f32.mxu1 %v1981_v9  ;;  %v399_v9 = vld [vmem:[#allocation2 + $0x68] sm:$0xff] }
 0x18f   : > { %805 = vmatprep.subr.mxu1 %v2380_v13 }
 0x192   : > { %806 = vmatpush1.msra.mxu1 %v2386_v15  ;;  %v401_v15 = vld [vmem:[#allocation2 + $0x78] sm:$0xff] }
 0x193   : > { %1511 = vmatmul.mubr.msk.f32.vlgmr.msra.gmra.mrb[14].mxu1 %vm450_vm1, %v1984_v33  ;;  %v407_v33 = vld [vmem:[#allocation2 + $0xa8] sm:$0xff] }
 0x220   : > { %v565_v36 = vpop.f32.mrb[0].mxu0 }
 0x221   : > { %v660_v37 = vadd.f32 %v565_v36, %v386_v34  ;;  %v567_v38 = vpop.f32.mrb[1].mxu0 }
 0x222   : > { %v661_v39 = vadd.f32 %v567_v38, %v387_v35  ;;  %v408_v38 = vld [vmem:[#allocation2 + $0xb0] sm:$0xff] }
 0x223   : > { %692 = vst [vmem:[#allocation2] sm:$0xff] %v660_v37 }
 0x224   : > { %693 = vst [vmem:[#allocation2 + $0x8] sm:$0xff] %v661_v39  ;;  %v571_v42 = vpop.f32.mrb[2].mxu0  ;;  %v409_v39 = vld [vmem:[#allocation2 + $0xb8] sm:$0xff] }
 0x225   : > { %v662_v43 = vadd.f32 %v571_v42, %v388_v40  ;;  %v573_v44 = vpop.f32.mrb[3].mxu0 }
 0x226   : > { %v663_v45 = vadd.f32 %v573_v44, %v389_v41  ;;  %v410_v44 = vld [vmem:[#allocation2 + $0xc0] sm:$0xff] }
 0x227   : > { %694 = vst [vmem:[#allocation2 + $0x10] sm:$0xff] %v662_v43 }
 0x228   : > { %695 = vst [vmem:[#allocation2 + $0x18] sm:$0xff] %v663_v45  ;;  %v577_v48 = vpop.f32.mrb[4].mxu0  ;;  %v411_v45 = vld [vmem:[#allocation2 + $0xc8] sm:$0xff] }
 0x229   : > { %v664_v49 = vadd.f32 %v577_v48, %v390_v46  ;;  %v579_v50 = vpop.f32.mrb[5].mxu0 }
 0x22a   : > { %v665_v51 = vadd.f32 %v579_v50, %v391_v47  ;;  %v412_v50 = vld [vmem:[#allocation2 + $0xd0] sm:$0xff] }
 0x22b   : > { %696 = vst [vmem:[#allocation2 + $0x20] sm:$0xff] %v664_v49 }
 0x22c   : > { %697 = vst [vmem:[#allocation2 + $0x28] sm:$0xff] %v665_v51  ;;  %v583_v54 = vpop.f32.mrb[6].mxu0  ;;  %v413_v51 = vld [vmem:[#allocation2 + $0xd8] sm:$0xff] }
 0x22d   : > { %v666_v55 = vadd.f32 %v583_v54, %v392_v52  ;;  %v585_v56 = vpop.f32.mrb[7].mxu0 }
 0x22e   : > { %v667_v57 = vadd.f32 %v585_v56, %v393_v53  ;;  %v414_v56 = vld [vmem:[#allocation2 + $0xe0] sm:$0xff] }
 0x22f   : > { %698 = vst [vmem:[#allocation2 + $0x30] sm:$0xff] %v666_v55 }
 0x230   : > { %699 = vst [vmem:[#allocation2 + $0x38] sm:$0xff] %v667_v57  ;;  %v589_v60 = vpop.f32.mrb[8].mxu0  ;;  %v415_v57 = vld [vmem:[#allocation2 + $0xe8] sm:$0xff] }
 0x231   : > { %v668_v61 = vadd.f32 %v589_v60, %v394_v58  ;;  %v591_v62 = vpop.f32.mrb[9].mxu0 }
 0x232   : > { %v669_v63 = vadd.f32 %v591_v62, %v395_v59  ;;  %v416_v62 = vld [vmem:[#allocation2 + $0xf0] sm:$0xff] }
 0x233   : > { %700 = vst [vmem:[#allocation2 + $0x40] sm:$0xff] %v668_v61 }
 0x234   : > { %701 = vst [vmem:[#allocation2 + $0x48] sm:$0xff] %v669_v63  ;;  %v595_v4 = vpop.f32.mrb[10].mxu0  ;;  %v417_v63 = vld [vmem:[#allocation2 + $0xf8] sm:$0xff] }
 0x235   : > { %v670_v5 = vadd.f32 %v595_v4, %v396_v1  ;;  %v597_v6 = vpop.f32.mrb[11].mxu0 }
 0x236   : > { %v671_v7 = vadd.f32 %v597_v6, %v397_v3  ;;  %v724_v6 = vld [vmem:[#allocation3] sm:$0x1] }
 0x237   : > { %702 = vst [vmem:[#allocation2 + $0x50] sm:$0xff] %v670_v5 }
 0x238   : > { %703 = vst [vmem:[#allocation2 + $0x58] sm:$0xff] %v671_v7  ;;  %v601_v10 = vpop.f32.mrb[12].mxu0  ;;  %v1985_v7 = vmov 1966171168  }
 0x239   : > { %v672_v11 = vadd.f32 %v601_v10, %v398_v8  ;;  %v603_v12 = vpop.f32.mrb[13].mxu0  ;;  %v876_v8 = vunpack.c.l.s4 %v1985_v7 }
 0x23a   : > { %v673_v13 = vadd.f32 %v603_v12, %v399_v9 }
 0x23b   : > { %704 = vst [vmem:[#allocation2 + $0x60] sm:$0xff] %v672_v11  ;;  %v877_v12 = vunpack.c.0.s8 %v876_v8 }
 0x23c   : > { %705 = vst [vmem:[#allocation2 + $0x68] sm:$0xff] %v673_v13  ;;  %v607_v16 = vpop.f32.mrb[14].mxu0  ;;  %v879_v13 = vshrl.u32 %v368_v0, 7 }
 0x23d   : > { %v674_v17 = vadd.f32 %v607_v16, %v400_v14  ;;  %v609_v18 = vpop.f32.mrb[15].mxu0 }
 0x23e   : > { %v675_v19 = vadd.f32 %v609_v18, %v401_v15  ;;  %v880_v15 = vsub.s32 %v877_v12, %v879_v13 }
 0x23f   : > { %706 = vst [vmem:[#allocation2 + $0x70] sm:$0xff] %v674_v17 }
 0x240   : > { %707 = vst [vmem:[#allocation2 + $0x78] sm:$0xff] %v675_v19  ;;  %v613_v22 = vpop.f32.mrb[16].mxu0  ;;  %v800_v19 = vld [vmem:[#allocation4] sm:$0x3] }
 0x241   : > { %v676_v23 = vadd.f32 %v613_v22, %v402_v20  ;;  %v615_v24 = vpop.f32.mrb[17].mxu0 }
 0x242   : > { %v677_v25 = vadd.f32 %v615_v24, %v403_v21 }
 0x243   : > { %708 = vst [vmem:[#allocation2 + $0x80] sm:$0xff] %v676_v23 }
 0x244   : > { %709 = vst [vmem:[#allocation2 + $0x88] sm:$0xff] %v677_v25  ;;  %v619_v28 = vpop.f32.mrb[18].mxu0 }
 0x245   : > { %v678_v29 = vadd.f32 %v619_v28, %v404_v26  ;;  %v621_v30 = vpop.f32.mrb[19].mxu0 }
 0x246   : > { %v679_v31 = vadd.f32 %v621_v30, %v405_v27 }
 0x247   : > { %710 = vst [vmem:[#allocation2 + $0x90] sm:$0xff] %v678_v29 }
 0x248   : > { %711 = vst [vmem:[#allocation2 + $0x98] sm:$0xff] %v679_v31  ;;  %v625_v34 = vpop.f32.mrb[0].mxu1 }
 0x249   : > { %v680_v35 = vadd.f32 %v625_v34, %v406_v32  ;;  %v627_v36 = vpop.f32.mrb[1].mxu1 }
 0x24a   : > { %v681_v37 = vadd.f32 %v627_v36, %v407_v33 }
 0x24b   : > { %712 = vst [vmem:[#allocation2 + $0xa0] sm:$0xff] %v680_v35 }
 0x24c   : > { %713 = vst [vmem:[#allocation2 + $0xa8] sm:$0xff] %v681_v37  ;;  %v631_v40 = vpop.f32.mrb[2].mxu1 }
 0x24d   : > { %v682_v41 = vadd.f32 %v631_v40, %v408_v38  ;;  %v633_v42 = vpop.f32.mrb[3].mxu1 }
 0x24e   : > { %v683_v43 = vadd.f32 %v633_v42, %v409_v39 }
 0x24f   : > { %714 = vst [vmem:[#allocation2 + $0xb0] sm:$0xff] %v682_v41 }
 0x250   : > { %715 = vst [vmem:[#allocation2 + $0xb8] sm:$0xff] %v683_v43  ;;  %v637_v46 = vpop.f32.mrb[4].mxu1 }
 0x251   : > { %v684_v47 = vadd.f32 %v637_v46, %v410_v44  ;;  %v639_v48 = vpop.f32.mrb[5].mxu1 }
 0x252   : > { %v685_v49 = vadd.f32 %v639_v48, %v411_v45 }
 0x253   : > { %716 = vst [vmem:[#allocation2 + $0xc0] sm:$0xff] %v684_v47 }
 0x254   : > { %717 = vst [vmem:[#allocation2 + $0xc8] sm:$0xff] %v685_v49  ;;  %v643_v52 = vpop.f32.mrb[6].mxu1 }
 0x255   : > { %v686_v53 = vadd.f32 %v643_v52, %v412_v50  ;;  %v645_v54 = vpop.f32.mrb[7].mxu1 }
 0x256   : > { %v687_v55 = vadd.f32 %v645_v54, %v413_v51 }
 0x257   : > { %718 = vst [vmem:[#allocation2 + $0xd0] sm:$0xff] %v686_v53 }
 0x258   : > { %719 = vst [vmem:[#allocation2 + $0xd8] sm:$0xff] %v687_v55  ;;  %v649_v58 = vpop.f32.mrb[8].mxu1 }
 0x259   : > { %v688_v59 = vadd.f32 %v649_v58, %v414_v56  ;;  %v651_v60 = vpop.f32.mrb[9].mxu1 }
 0x25a   : > { %v689_v61 = vadd.f32 %v651_v60, %v415_v57 }
 0x25b   : > { %720 = vst [vmem:[#allocation2 + $0xe0] sm:$0xff] %v688_v59 }
 0x25c   : > { %721 = vst [vmem:[#allocation2 + $0xe8] sm:$0xff] %v689_v61  ;;  %v655_v1 = vpop.f32.mrb[10].mxu1 }
 0x25d   : > { %v690_v3 = vadd.f32 %v655_v1, %v416_v62  ;;  %v657_v4 = vpop.f32.mrb[11].mxu1 }
 0x25e   : > { %v691_v5 = vadd.f32 %v657_v4, %v417_v63 }
 0x25f   : > { %722 = vst [vmem:[#allocation2 + $0xf0] sm:$0xff] %v690_v3 }
 0x260   : > { %723 = vst [vmem:[#allocation2 + $0xf8] sm:$0xff] %v691_v5  ;;  %v794_v9 = vpop.f32.mrb[12].mxu1 }
 0x261   : > { %v798_v10 = vadd.f32 %v794_v9, %v724_v6  ;;  %v1553_v11 = vpop.f32.mrb[13].mxu1 }
 0x263   : > { %799 = vst [vmem:[#allocation3] sm:$0x1] %v798_v10 }
 0x266   : > { %v867_v14 = vpop.f32.mrb[14].mxu1 }
 0x267   : > { %v869_v16 = vpop.f32.mrb[15].mxu1 }
 0x268   : > { %v874_v17 = vcombine.low %v867_v14, %v869_v16 }
 0x26a   : > { %v881_v18 = vrot.slane %v874_v17, %v880_v15 }
 0x26c   : > { %v888_v20 = vrot.slane %v881_v18, %v880_v15 }
 0x26e   : > { %v890_v21 = vadd.f32 %v888_v20, %v800_v19 }
 0x270   : > { %895 = vst.msk [vmem:[#allocation4] sm:$0x3] %vm2361_vm0, %v890_v21 }
 0x271 PF: > { %s1512_s12 = sadd.s32 4294967295, %s2354_s6 }
 0x272   : > { %p1514_p1 = scmp.ne.s32.totalorder %s1512_s12, 0 }
 0x273   : > { %v938_v23 = vshrl.u32 (!%p1514_p1), %v368_v0, 7  ;;  %v1986_v27 = vmov (!%p1514_p1), 0.0   ;;  %vm994_vm3 = vcmask (!%p1514_p1), 1040384   ;;  %vm945_vm4 = vcmask (!%p1514_p1), 7168   ;;  %s901_s8 = sld [smem:[#allocation8 + %s1961_s15]] (!%p1514_p1)  ;;  %v1160_v46 = vld [vmem:[#allocation2] sm:$0xff] (!%p1514_p1) }
 0x274   : > { %900 = sbr.rel (%p1514_p1) target bundleno = 1249 (0x4e1), region = 56  ;;  %1063 = vmatprep.mubr.f32.mxu0 (!%p1514_p1), %v1986_v27  ;;  %1111 = vmatprep.mubr.f32.mxu1 (!%p1514_p1), %v1986_v27  ;;  %v1161_v49 = vld [vmem:[#allocation2 + $0x8] sm:$0xff] (!%p1514_p1)  ;;  %v1162_v54 = vld [vmem:[#allocation2 + $0x10] sm:$0xff] (!%p1514_p1)  ;;  %v1163_v58 = vld [vmem:[#allocation2 + $0x18] sm:$0xff] (!%p1514_p1) }
 0x275   : > { %v939_v25 = vsub.s32 (!%p1514_p1), 0, %v938_v23  ;;  %v943_v26 = vsub.s32 (!%p1514_p1), 1, %v938_v23  ;;  %v1164_v3 = vld [vmem:[#allocation2 + $0x20] sm:$0xff] (!%p1514_p1)  ;;  %v1165_v7 = vld [vmem:[#allocation2 + $0x28] sm:$0xff] (!%p1514_p1)  ;;  %v1166_v14 = vld [vmem:[#allocation2 + $0x30] sm:$0xff] (!%p1514_p1) }
 0x276   : > { %v1167_v19 = vld [vmem:[#allocation2 + $0x38] sm:$0xff] (!%p1514_p1) }
 0x277   : > { %v902_v22 = vld [vmem:[#allocation3] sm:$0x1] (!%p1514_p1)  ;;  %v903_v24 = vld [vmem:[#allocation4] sm:$0x3] (!%p1514_p1) }
 0x278   : > { %904 = vxpose.xlu0.b32.start.end [1/1] (short) (!%p1514_p1), %v902_v22, 128  ;;  %v940_v28 = vrot.slane (!%p1514_p1), %v903_v24, %v939_v25  ;;  %v944_v29 = vrot.slane (!%p1514_p1), %v903_v24, %v943_v26  ;;  %v1168_v26 = vld [vmem:[#allocation2 + $0x40] sm:$0xff] (!%p1514_p1) }
 0x279   : > { %v2452_v44 = vstv (!%p1514_p1), %s901_s8 }
 0x27a   : > { %1515 = vmatprep.subr.msk.mxu0 (!%p1514_p1), %vm994_vm3, %v944_v29  ;;  %1569 = vmatprep.subr.msk.mxu1 (!%p1514_p1), %vm994_vm3, %v944_v29 }
 0x27b   : > { %1516 = vmatpush1.msk.msra.mxu0 %vm994_vm3, %v940_v28  ;;  %1570 = vmatpush1.msk.msra.mxu1 %vm994_vm3, %v940_v28 }
 0x2f8   : > { %v920_v2 = vpop.trf.xlu0 }
 0x2f9   : > { %1517 = vmatmul.mubr.msk.f32.vlgmr.msra.gmra.mrb[0].mxu0 %vm945_vm4, %v920_v2 }
 0x2fa   : > { %1069 = vmatprep.mubr.f32.mxu0 %v1986_v27 }
 0x2fc   : > { %v921_v0 = vpop.trf.xlu0 }
 0x2fd   : > { %1518 = vmatmul.mubr.msk.f32.gmra.mrb[2].mxu0 %vm945_vm4, %v921_v0  ;;  %v1169_v0 = vld [vmem:[#allocation2 + $0x48] sm:$0xff] }
 0x2fe   : > { %1075 = vmatprep.mubr.f32.mxu0 %v1986_v27 }
 0x300   : > { %v922_v30 = vpop.trf.xlu0 }
 0x301   : > { %1519 = vmatmul.mubr.msk.f32.gmra.mrb[4].mxu0 %vm945_vm4, %v922_v30 }
 0x302   : > { %1081 = vmatprep.mubr.f32.mxu0 %v1986_v27 }
 0x304   : > { %v923_v31 = vpop.trf.xlu0 }
 0x305   : > { %1520 = vmatmul.mubr.msk.f32.gmra.mrb[6].mxu0 %vm945_vm4, %v923_v31 }
 0x306   : > { %1087 = vmatprep.mubr.f32.mxu0 %v1986_v27 }
 0x308   : > { %v924_v32 = vpop.trf.xlu0 }
 0x309   : > { %1521 = vmatmul.mubr.msk.f32.gmra.mrb[8].mxu0 %vm945_vm4, %v924_v32 }
 0x30a   : > { %1093 = vmatprep.mubr.f32.mxu0 %v1986_v27 }
 0x30c   : > { %v925_v33 = vpop.trf.xlu0 }
 0x30d   : > { %1522 = vmatmul.mubr.msk.f32.gmra.mrb[10].mxu0 %vm945_vm4, %v925_v33 }
 0x30e   : > { %1099 = vmatprep.mubr.f32.mxu0 %v1986_v27 }
 0x310   : > { %v926_v34 = vpop.trf.xlu0 }
 0x311   : > { %1523 = vmatmul.mubr.msk.f32.gmra.mrb[12].mxu0 %vm945_vm4, %v926_v34 }
 0x312   : > { %1105 = vmatprep.mubr.f32.mxu0 %v1986_v27 }
 0x314   : > { %v927_v35 = vpop.trf.xlu0 }
 0x315   : > { %1524 = vmatmul.mubr.msk.f32.gmra.mrb[14].mxu0 %vm945_vm4, %v927_v35 }
 0x318   : > { %v928_v36 = vpop.trf.xlu0 }
 0x319   : > { %1525 = vmatmul.mubr.msk.f32.vlgmr.msra.gmra.mrb[0].mxu1 %vm945_vm4, %v928_v36  ;;  %v1170_v36 = vld [vmem:[#allocation2 + $0x50] sm:$0xff] }
 0x31a   : > { %1117 = vmatprep.mubr.f32.mxu1 %v1986_v27 }
 0x31c   : > { %v929_v37 = vpop.trf.xlu0 }
 0x31d   : > { %1526 = vmatmul.mubr.msk.f32.gmra.mrb[2].mxu1 %vm945_vm4, %v929_v37 }
 0x31e   : > { %1123 = vmatprep.mubr.f32.mxu1 %v1986_v27 }
 0x320   : > { %v930_v38 = vpop.trf.xlu0 }
 0x321   : > { %1527 = vmatmul.mubr.msk.f32.gmra.mrb[4].mxu1 %vm945_vm4, %v930_v38 }
 0x322   : > { %1129 = vmatprep.mubr.f32.mxu1 %v1986_v27 }
 0x324   : > { %v931_v39 = vpop.trf.xlu0 }
 0x325   : > { %1528 = vmatmul.mubr.msk.f32.gmra.mrb[6].mxu1 %vm945_vm4, %v931_v39 }
 0x326   : > { %1135 = vmatprep.mubr.f32.mxu1 %v1986_v27 }
 0x328   : > { %v932_v40 = vpop.trf.xlu0 }
 0x329   : > { %1529 = vmatmul.mubr.msk.f32.gmra.mrb[8].mxu1 %vm945_vm4, %v932_v40 }
 0x32a   : > { %1141 = vmatprep.mubr.f32.mxu1 %v1986_v27 }
 0x32c   : > { %v933_v41 = vpop.trf.xlu0 }
 0x32d   : > { %1530 = vmatmul.mubr.msk.f32.gmra.mrb[10].mxu1 %vm945_vm4, %v933_v41  ;;  %v1171_v41 = vld [vmem:[#allocation2 + $0x58] sm:$0xff] }
 0x32e   : > { %1147 = vmatprep.mubr.f32.mxu1 %v1986_v27 }
 0x330   : > { %v934_v42 = vpop.trf.xlu0 }
 0x331   : > { %1531 = vmatmul.mubr.msk.f32.gmra.mrb[12].mxu1 %vm945_vm4, %v934_v42 }
 0x332   : > { %1153 = vmatprep.mubr.f32.mxu1 %v1986_v27 }
 0x334   : > { %v935_v43 = vpop.trf.xlu0 }
 0x335   : > { %1532 = vmatmul.mubr.msk.f32.gmra.mrb[14].mxu1 %vm945_vm4, %v935_v43 }
 0x3cc   : > { %v1065_v45 = vpop.f32.mrb[0].mxu0 }
 0x3cd   : > { %v1193_v47 = vmul.f32 %v2452_v44, %v1065_v45  ;;  %v1067_v48 = vpop.f32.mrb[1].mxu0 }
 0x3ce   : > { %v1194_v50 = vmul.f32 %v2452_v44, %v1067_v48 }
 0x3cf   : > { %v1225_v51 = vsub.f32 %v1160_v46, %v1193_v47 }
 0x3d0   : > { %v1226_v52 = vsub.f32 %v1161_v49, %v1194_v50  ;;  %v1071_v53 = vpop.f32.mrb[2].mxu0  ;;  %v1172_v49 = vld [vmem:[#allocation2 + $0x60] sm:$0xff] }
 0x3d1   : > { %v1257_v55 = vmul.f32 %v1225_v51, %v1225_v51  ;;  %v1195_v56 = vmul.f32 %v2452_v44, %v1071_v53  ;;  %v1073_v57 = vpop.f32.mrb[3].mxu0 }
 0x3d2   : > { %v1258_v59 = vmul.f32 %v1226_v52, %v1226_v52  ;;  %v1196_v60 = vmul.f32 %v2452_v44, %v1073_v57 }
 0x3d3   : > { %v1227_v61 = vsub.f32 %v1162_v54, %v1195_v56  ;;  %v1173_v54 = vld [vmem:[#allocation2 + $0x68] sm:$0xff] }
 0x3d4   : > { %v1289_v62 = vadd.f32 %v1258_v59, %v1257_v55  ;;  %v1228_v63 = vsub.f32 %v1163_v58, %v1196_v60  ;;  %v1077_v1 = vpop.f32.mrb[4].mxu0 }
 0x3d5   : > { %v1259_v4 = vmul.f32 %v1227_v61, %v1227_v61  ;;  %v1197_v5 = vmul.f32 %v2452_v44, %v1077_v1  ;;  %v1079_v6 = vpop.f32.mrb[5].mxu0  ;;  %v1174_v61 = vld [vmem:[#allocation2 + $0x70] sm:$0xff] }
 0x3d6   : > { %v1260_v8 = vmul.f32 %v1228_v63, %v1228_v63  ;;  %v1198_v9 = vmul.f32 %v2452_v44, %v1079_v6 }
 0x3d7   : > { %v1290_v10 = vadd.f32 %v1289_v62, %v1259_v4  ;;  %v1229_v11 = vsub.f32 %v1164_v3, %v1197_v5  ;;  %v1175_v4 = vld [vmem:[#allocation2 + $0x78] sm:$0xff] }
 0x3d8   : > { %v1230_v12 = vsub.f32 %v1165_v7, %v1198_v9  ;;  %v1083_v13 = vpop.f32.mrb[6].mxu0 }
 0x3d9   : > { %v1291_v15 = vadd.f32 %v1290_v10, %v1260_v8  ;;  %v1261_v16 = vmul.f32 %v1229_v11, %v1229_v11  ;;  %v1199_v17 = vmul.f32 %v2452_v44, %v1083_v13  ;;  %v1085_v18 = vpop.f32.mrb[7].mxu0  ;;  %v1176_v11 = vld [vmem:[#allocation2 + $0x80] sm:$0xff] }
 0x3da   : > { %v1262_v20 = vmul.f32 %v1230_v12, %v1230_v12  ;;  %v1200_v21 = vmul.f32 %v2452_v44, %v1085_v18 }
 0x3db   : > { %v1292_v22 = vadd.f32 %v1291_v15, %v1261_v16  ;;  %v1231_v23 = vsub.f32 %v1166_v14, %v1199_v17  ;;  %v1177_v16 = vld [vmem:[#allocation2 + $0x88] sm:$0xff] }
 0x3dc   : > { %v1232_v24 = vsub.f32 %v1167_v19, %v1200_v21  ;;  %v1089_v25 = vpop.f32.mrb[8].mxu0 }
 0x3dd   : > { %v1293_v27 = vadd.f32 %v1292_v22, %v1262_v20  ;;  %v1263_v28 = vmul.f32 %v1231_v23, %v1231_v23  ;;  %v1201_v29 = vmul.f32 %v2452_v44, %v1089_v25  ;;  %v1091_v2 = vpop.f32.mrb[9].mxu0  ;;  %v1178_v23 = vld [vmem:[#allocation2 + $0x90] sm:$0xff] }
 0x3de   : > { %v1264_v30 = vmul.f32 %v1232_v24, %v1232_v24  ;;  %v1202_v31 = vmul.f32 %v2452_v44, %v1091_v2 }
 0x3df   : > { %v1294_v32 = vadd.f32 %v1293_v27, %v1263_v28  ;;  %v1233_v33 = vsub.f32 %v1168_v26, %v1201_v29  ;;  %v1179_v28 = vld [vmem:[#allocation2 + $0x98] sm:$0xff] }
 0x3e0   : > { %v1234_v34 = vsub.f32 %v1169_v0, %v1202_v31  ;;  %v1095_v35 = vpop.f32.mrb[10].mxu0 }
 0x3e1   : > { %v1295_v37 = vadd.f32 %v1294_v32, %v1264_v30  ;;  %v1265_v38 = vmul.f32 %v1233_v33, %v1233_v33  ;;  %v1203_v39 = vmul.f32 %v2452_v44, %v1095_v35  ;;  %v1097_v40 = vpop.f32.mrb[11].mxu0  ;;  %v1180_v33 = vld [vmem:[#allocation2 + $0xa0] sm:$0xff] }
 0x3e2   : > { %v1266_v42 = vmul.f32 %v1234_v34, %v1234_v34  ;;  %v1204_v43 = vmul.f32 %v2452_v44, %v1097_v40 }
 0x3e3   : > { %v1296_v45 = vadd.f32 %v1295_v37, %v1265_v38  ;;  %v1235_v46 = vsub.f32 %v1170_v36, %v1203_v39  ;;  %v1181_v38 = vld [vmem:[#allocation2 + $0xa8] sm:$0xff] }
 0x3e4   : > { %v1236_v47 = vsub.f32 %v1171_v41, %v1204_v43  ;;  %v1101_v48 = vpop.f32.mrb[12].mxu0 }
 0x3e5   : > { %v1297_v50 = vadd.f32 %v1296_v45, %v1266_v42  ;;  %v1267_v51 = vmul.f32 %v1235_v46, %v1235_v46  ;;  %v1205_v52 = vmul.f32 %v2452_v44, %v1101_v48  ;;  %v1103_v53 = vpop.f32.mrb[13].mxu0  ;;  %v1182_v46 = vld [vmem:[#allocation2 + $0xb0] sm:$0xff] }
 0x3e6   : > { %v1268_v55 = vmul.f32 %v1236_v47, %v1236_v47  ;;  %v1206_v56 = vmul.f32 %v2452_v44, %v1103_v53 }
 0x3e7   : > { %v1298_v57 = vadd.f32 %v1297_v50, %v1267_v51  ;;  %v1237_v58 = vsub.f32 %v1172_v49, %v1205_v52  ;;  %v1183_v51 = vld [vmem:[#allocation2 + $0xb8] sm:$0xff] }
 0x3e8   : > { %v1238_v59 = vsub.f32 %v1173_v54, %v1206_v56  ;;  %v1107_v60 = vpop.f32.mrb[14].mxu0 }
 0x3e9   : > { %v1299_v62 = vadd.f32 %v1298_v57, %v1268_v55  ;;  %v1269_v63 = vmul.f32 %v1237_v58, %v1237_v58  ;;  %v1207_v1 = vmul.f32 %v2452_v44, %v1107_v60  ;;  %v1109_v3 = vpop.f32.mrb[15].mxu0  ;;  %v1184_v58 = vld [vmem:[#allocation2 + $0xc0] sm:$0xff] }
 0x3ea   : > { %v1270_v5 = vmul.f32 %v1238_v59, %v1238_v59  ;;  %v1208_v6 = vmul.f32 %v2452_v44, %v1109_v3 }
 0x3eb   : > { %v1300_v7 = vadd.f32 %v1299_v62, %v1269_v63  ;;  %v1239_v8 = vsub.f32 %v1174_v61, %v1207_v1  ;;  %v1185_v63 = vld [vmem:[#allocation2 + $0xc8] sm:$0xff] }
 0x3ec   : > { %v1240_v9 = vsub.f32 %v1175_v4, %v1208_v6  ;;  %v1113_v10 = vpop.f32.mrb[0].mxu1 }
 0x3ed   : > { %v1301_v12 = vadd.f32 %v1300_v7, %v1270_v5  ;;  %v1271_v13 = vmul.f32 %v1239_v8, %v1239_v8  ;;  %v1209_v14 = vmul.f32 %v2452_v44, %v1113_v10  ;;  %v1115_v15 = vpop.f32.mrb[1].mxu1  ;;  %v1186_v8 = vld [vmem:[#allocation2 + $0xd0] sm:$0xff] }
 0x3ee   : > { %v1272_v17 = vmul.f32 %v1240_v9, %v1240_v9  ;;  %v1210_v18 = vmul.f32 %v2452_v44, %v1115_v15 }
 0x3ef   : > { %v1302_v19 = vadd.f32 %v1301_v12, %v1271_v13  ;;  %v1241_v20 = vsub.f32 %v1176_v11, %v1209_v14  ;;  %v1187_v13 = vld [vmem:[#allocation2 + $0xd8] sm:$0xff] }
 0x3f0   : > { %v1242_v21 = vsub.f32 %v1177_v16, %v1210_v18  ;;  %v1119_v22 = vpop.f32.mrb[2].mxu1 }
 0x3f1   : > { %v1303_v24 = vadd.f32 %v1302_v19, %v1272_v17  ;;  %v1273_v25 = vmul.f32 %v1241_v20, %v1241_v20  ;;  %v1211_v26 = vmul.f32 %v2452_v44, %v1119_v22  ;;  %v1121_v27 = vpop.f32.mrb[3].mxu1  ;;  %v1188_v20 = vld [vmem:[#allocation2 + $0xe0] sm:$0xff] }
 0x3f2   : > { %v1274_v29 = vmul.f32 %v1242_v21, %v1242_v21  ;;  %v1212_v2 = vmul.f32 %v2452_v44, %v1121_v27 }
 0x3f3   : > { %v1304_v0 = vadd.f32 %v1303_v24, %v1273_v25  ;;  %v1243_v30 = vsub.f32 %v1178_v23, %v1211_v26  ;;  %v1189_v25 = vld [vmem:[#allocation2 + $0xe8] sm:$0xff] }
 0x3f4   : > { %v1244_v31 = vsub.f32 %v1179_v28, %v1212_v2  ;;  %v1125_v32 = vpop.f32.mrb[4].mxu1 }
 0x3f5   : > { %v1305_v34 = vadd.f32 %v1304_v0, %v1274_v29  ;;  %v1275_v35 = vmul.f32 %v1243_v30, %v1243_v30  ;;  %v1213_v36 = vmul.f32 %v2452_v44, %v1125_v32  ;;  %v1127_v37 = vpop.f32.mrb[5].mxu1  ;;  %v1190_v30 = vld [vmem:[#allocation2 + $0xf0] sm:$0xff] }
 0x3f6   : > { %v1276_v39 = vmul.f32 %v1244_v31, %v1244_v31  ;;  %v1214_v40 = vmul.f32 %v2452_v44, %v1127_v37 }
 0x3f7   : > { %v1306_v41 = vadd.f32 %v1305_v34, %v1275_v35  ;;  %v1245_v42 = vsub.f32 %v1180_v33, %v1213_v36  ;;  %v1191_v35 = vld [vmem:[#allocation2 + $0xf8] sm:$0xff] }
 0x3f8   : > { %v1246_v43 = vsub.f32 %v1181_v38, %v1214_v40  ;;  %v1131_v45 = vpop.f32.mrb[6].mxu1 }
 0x3f9   : > { %v1307_v47 = vadd.f32 %v1306_v41, %v1276_v39  ;;  %v1277_v48 = vmul.f32 %v1245_v42, %v1245_v42  ;;  %v1215_v49 = vmul.f32 %v2452_v44, %v1131_v45  ;;  %v1133_v50 = vpop.f32.mrb[7].mxu1 }
 0x3fa   : > { %v1278_v52 = vmul.f32 %v1246_v43, %v1246_v43  ;;  %v1216_v53 = vmul.f32 %v2452_v44, %v1133_v50 }
 0x3fb   : > { %v1308_v54 = vadd.f32 %v1307_v47, %v1277_v48  ;;  %v1247_v55 = vsub.f32 %v1182_v46, %v1215_v49 }
 0x3fc   : > { %v1248_v56 = vsub.f32 %v1183_v51, %v1216_v53  ;;  %v1137_v57 = vpop.f32.mrb[8].mxu1 }
 0x3fd   : > { %v1309_v59 = vadd.f32 %v1308_v54, %v1278_v52  ;;  %v1279_v60 = vmul.f32 %v1247_v55, %v1247_v55  ;;  %v1217_v61 = vmul.f32 %v2452_v44, %v1137_v57  ;;  %v1139_v62 = vpop.f32.mrb[9].mxu1 }
 0x3fe   : > { %v1280_v1 = vmul.f32 %v1248_v56, %v1248_v56  ;;  %v1218_v3 = vmul.f32 %v2452_v44, %v1139_v62 }
 0x3ff   : > { %v1310_v4 = vadd.f32 %v1309_v59, %v1279_v60  ;;  %v1249_v5 = vsub.f32 %v1184_v58, %v1217_v61 }
 0x400   : > { %v1250_v6 = vsub.f32 %v1185_v63, %v1218_v3  ;;  %v1143_v7 = vpop.f32.mrb[10].mxu1 }
 0x401   : > { %v1311_v9 = vadd.f32 %v1310_v4, %v1280_v1  ;;  %v1281_v10 = vmul.f32 %v1249_v5, %v1249_v5  ;;  %v1219_v11 = vmul.f32 %v2452_v44, %v1143_v7  ;;  %v1145_v12 = vpop.f32.mrb[11].mxu1 }
 0x402   : > { %v1282_v14 = vmul.f32 %v1250_v6, %v1250_v6  ;;  %v1220_v15 = vmul.f32 %v2452_v44, %v1145_v12 }
 0x403   : > { %v1312_v16 = vadd.f32 %v1311_v9, %v1281_v10  ;;  %v1251_v17 = vsub.f32 %v1186_v8, %v1219_v11 }
 0x404   : > { %v1252_v18 = vsub.f32 %v1187_v13, %v1220_v15  ;;  %v1149_v19 = vpop.f32.mrb[12].mxu1 }
 0x405   : > { %v1313_v21 = vadd.f32 %v1312_v16, %v1282_v14  ;;  %v1283_v22 = vmul.f32 %v1251_v17, %v1251_v17  ;;  %v1221_v23 = vmul.f32 %v2452_v44, %v1149_v19  ;;  %v1151_v24 = vpop.f32.mrb[13].mxu1 }
 0x406   : > { %v1284_v26 = vmul.f32 %v1252_v18, %v1252_v18  ;;  %v1222_v27 = vmul.f32 %v2452_v44, %v1151_v24 }
 0x407   : > { %v1314_v28 = vadd.f32 %v1313_v21, %v1283_v22  ;;  %v1253_v29 = vsub.f32 %v1188_v20, %v1221_v23 }
 0x408   : > { %v1254_v2 = vsub.f32 %v1189_v25, %v1222_v27  ;;  %v1155_v0 = vpop.f32.mrb[14].mxu1 }
 0x409   : > { %v1315_v31 = vadd.f32 %v1314_v28, %v1284_v26  ;;  %v1285_v32 = vmul.f32 %v1253_v29, %v1253_v29  ;;  %v1223_v33 = vmul.f32 %v2452_v44, %v1155_v0  ;;  %v1157_v34 = vpop.f32.mrb[15].mxu1 }
 0x40a   : > { %v1286_v36 = vmul.f32 %v1254_v2, %v1254_v2  ;;  %v1224_v37 = vmul.f32 %v2452_v44, %v1157_v34 }
 0x40b   : > { %v1316_v38 = vadd.f32 %v1315_v31, %v1285_v32  ;;  %v1255_v39 = vsub.f32 %v1190_v30, %v1223_v33 }
 0x40c   : > { %v1256_v40 = vsub.f32 %v1191_v35, %v1224_v37 }
 0x40d   : > { %v1317_v41 = vadd.f32 %v1316_v38, %v1286_v36  ;;  %v1287_v42 = vmul.f32 %v1255_v39, %v1255_v39 }
 0x40e   : > { %v1288_v43 = vmul.f32 %v1256_v40, %v1256_v40 }
 0x40f   : > { %v1318_v45 = vadd.f32 %v1317_v41, %v1287_v42 }
 0x411   : > { %v1319_v46 = vadd.f32 %v1318_v45, %v1288_v43 }
 0x413   : > { %1320 = vadd.xlane.f32.xlu0 %v1319_v46 }
 0x4a0   : > { %v1321_v47 = vpop.xlane.xlu0 %1320 }
 0x4a1   : > { %v1322_v48 = vrot.slane %v1321_v47, 4 }
 0x4a3   : > { %v1323_v49 = vadd.f32 %v1322_v48, %v1321_v47 }
 0x4a5   : > { %v1324_v50 = vrot.slane %v1323_v49, 2 }
 0x4a7   : > { %v1325_v51 = vadd.f32 %v1324_v50, %v1323_v49 }
 0x4a9   : > { %v1326_v52 = vrot.slane %v1325_v51, 1 }
 0x4ab   : > { %v1327_v53 = vadd.f32 %v1326_v52, %v1325_v51 }
 0x4ad   : > { %1575 = vpush %v1327_v53 }
 0x4de   : > { %s1576_s18 = spop %1575 }
 0x4df   : > { %v1330_v44 = vstv %s1576_s18 }
 0x4e0   : > { %1331 = vst [vmem:[%s314_s24] sm:$0xff] %v1330_v44 }
 0x4e1 PF: > { %s1534_s26 = sshll.u32 %s1961_s15, 7  ;;  %s2614_s0 = sld [smem:[#allocation37_spill]] }
 0x4e2   : > { %s1347_s28 = sshll.u32 %s314_s24, 4  ;;  %s1333_s22 = scalar_lea.sflag [#allocation10], %s312_s21  ;;  %s1348_s28 = int_to_ptr.vmem [resolvable:$true] %s1347_s28 }
 0x4e3   : > { %s1829_s3 = scalar_lea.vmem %s1348_s28, 128  ;;  %p2616_p3 = scmp.ne.s32.totalorder %s2587_s27, 0 }
 0x4e4   : > { %p1830_p11 = scmp.ne.s32.totalorder %s1348_s28, %s1829_s3  ;;  %s1987_s7 = smov [#allocation15]  }
 0x4e5   : > { %s1833_s20 = sshll.u32 %s1987_s7, 4  ;;  %s1834_s20 = int_to_ptr.vmem [resolvable:$false] %s1833_s20 }
 0x4e6   : > { %p1831_p7 = pnand %p1830_p11, %p2616_p3  ;;  %s1835_s9 = scalar_lea.vmem %s1834_s20, 256 }
 0x4e7   : > { %s2615_s29 = smov %s2614_s0  ;;  %s2492_s2 = scalar_lea.hbm %s2614_s0, %s1534_s26 }
 0x4e8   : > { %p1832_p2 = pneg %p1831_p7  ;;  %p1836_p4 = scmp.lt.s32.totalorder %s1348_s28, %s1834_s20 }
 0x4e9   : > { %p1837_p0 = scmp.lt.s32.totalorder %s1835_s9, %s1829_s3 }
 0x4eb   : > { %p1838_p10 = por %p1837_p0, %p1836_p4 }
 0x4ed   : > { %p1839_p12 = pnand %p1838_p10, %p1832_p2 }
 0x4ef   : > { %1842 = shalt.err (!%p1839_p12)
}
 0x4f0   : > { %s1843_s15 = scalar_lea.hbm %s2492_s2, 128  ;;  %s1847_s6 = scalar_lea.hbm %s2615_s29, 256 }
 0x4f1   : > { %p1844_p5 = scmp.ne.s32.totalorder %s2492_s2, %s1843_s15  ;;  %p1848_p8 = scmp.lt.u32.totalorder %s2492_s2, %s2615_s29 }
 0x4f2   : > { %p1849_p9 = scmp.lt.u32.totalorder %s1847_s6, %s1843_s15  ;;  %p1851_p11 = scmp.lt.u32.totalorder %s1843_s15, %s2492_s2 }
 0x4f3   : > { %p1845_p6 = pnand %p1844_p5, %p2616_p3 }
 0x4f4   : > { %p1850_p1 = por %p1849_p9, %p1848_p8 }
 0x4f5   : > { %p1846_p13 = pneg %p1845_p6 }
 0x4f6   : > { %p1852_p7 = por %p1851_p11, %p1850_p1 }
 0x4f8   : > { %p1853_p2 = pnand %p1852_p7, %p1846_p13 }
 0x4fa   : > { %1856 = shalt.err (!%p1853_p2)
}
 0x4fb   : > { %1593 = dma.vmem_to_hbm [thread:$0]  (%p2616_p3), %s1348_s28, 128, %s2492_s2, %s1333_s22  }
 0x4fc PF: > { %s2617_s12 = sld [smem:[#allocation29_spill]]  ;;  %s2618_s8 = sld [smem:[#allocation33_spill]] }
 0x4fd   : > { %p2620_p0 = scmp.ge.s32.totalorder %s1969_s17, 2 }
 0x502   : > { %s1359_s18 = sand.u32 1, %s2617_s12   ;;  %p2619_p4 = scmp.ne.s32.totalorder %s2618_s8, 0 }
 0x503   : > { %s1360_s26 = scalar_lea.sflag [#allocation10], %s1359_s18 }
 0x504   : > { %p1615_p10 = pnand %p2620_p0, %p2619_p4 }
 0x506   : > { %1920 = dma.done.wait (!%p1615_p10), %s1360_s26, 128  }
 0x507   : > { %1922 = vsyncadd (!%p1615_p10), %s1360_s26, 4294967168  ;;  %s33_s17 = sadd.s32 1, %s1969_s17   ;;  %s2621_s30 = sld [smem:[#allocation30_spill]] }
 0x508   : > { %p30_p12 = scmp.ge.s32.totalorder %s33_s17, 4   ;;  %s2622_s8 = sld [smem:[#allocation32_spill]] }
 0x509   : > { %s2623_s27 = sld [smem:[#allocation34_spill]]  ;;  %s2624_s19 = sld [smem:[#allocation31_spill]] }
 0x50a   : > { %s2625_s0 = smov %s1929_s1  ;;  %s2627_s9 = smov %s1941_s10 }
 0x50b   : > { %s2628_s10 = smov %s1945_s11  ;;  %s2629_s11 = smov %s2284_s25 }
 0x50c   : > { %s2630_s12 = smov %s1953_s13  ;;  %s2631_s13 = smov %s1957_s14 }
 0x50d   : > { %s2626_s1 = smov %s2621_s30  ;;  %s2633_s15 = smov %s1965_s16 }
 0x50e   :  { %32 = sbr.rel (!%p30_p12) target bundleno = 35 (0x23), region = 107 }
 0x50f   : > { %s2632_s14 = smov %s2623_s27  ;;  %s2634_s16 = smov %s2624_s19 }
 0x515   :  { %1365 = vsyncpa [#allocation9], 1 }
 0x516   :  { %1367 = vsyncpa [#allocation9 + $0x1], 1 }
 0x517   :  { %1368 = vsyncpa [#allocation14], 1 }
 0x518   :  { %1370 = vsyncpa [#allocation14 + $0x1], 1 }
 0x519   :  { %1371 = vsyncpa [#allocation10], 1 }
 0x51a   :  { %1373 = vsyncpa [#allocation10 + $0x1], 1 }
 0x51b   :  { %1374 = vsyncpa [#allocation11], 1 }
 0x51c   :  { %1376 = vsyncpa [#allocation11 + $0x1], 1 }

</bundles_post_ra>
